<compile_context>
chip_gen: v7x
topology: tpu7x:2x2x1
jax: 0.10.0
libtpu: 0.0.40
codegen_flags: <defaults>
</compile_context>

<pallas_src>
import jax
import jax.numpy as jnp
import numpy as np
from jax.experimental import pallas as pl
from jax.experimental.pallas import tpu as pltpu


def _round_up(n, m):
    return ((n + m - 1) // m) * m


def _lstm_fc_kernel(x_ref, wih_ref, whh_ref, b_ref, wfc_ref, bfc_ref,
                    out_ref, xproj_ref):
    """Single-invocation kernel: whole sequence resident in VMEM.

    x_ref     : (T*B, I)    time-major, batch-padded inputs (bf16 or f32)
    wih_ref   : (I, 4Hp)    input->gates weights, gate order (i,f,o,g), lane-padded
    whh_ref   : (Hp, 4Hp)   hidden->gates weights, same layout
    b_ref     : (1, 4Hp)    combined bias (b_ih + b_hh), f32
    wfc_ref   : (Hp, Op)    final linear weights (transposed, padded)
    bfc_ref   : (1, Op)     final linear bias (padded), f32
    out_ref   : (B, Op)     logits for the last timestep (padded lanes zero-ish)
    xproj_ref : (T*B, 4Hp)  VMEM scratch: hoisted input projection (f32)
    """
    TB = x_ref.shape[0]
    Hp = whh_ref.shape[1] // 4
    B = out_ref.shape[0]
    T = TB // B

    # Hoisted input projection + bias: one big MXU matmul, off the serial chain.
    xproj_ref[...] = (
        jnp.dot(x_ref[...], wih_ref[...], preferred_element_type=jnp.float32)
        + b_ref[...])

    whh = whh_ref[...]                                # (Hp, 4Hp), loaded once
    mxu_dtype = whh.dtype                             # bf16 (fast) or f32 (exact)
    h0 = jnp.zeros((B, Hp), jnp.float32)
    c0 = jnp.zeros((B, Hp), jnp.float32)

    def step(t, carry):
        h, c = carry
        row = pl.multiple_of(t * B, 8)                # sublane-aligned slab
        gates = (xproj_ref[pl.ds(row, B), :]
                 + jnp.dot(h.astype(mxu_dtype), whh,
                           preferred_element_type=jnp.float32))
        # Gate order (i, f, o, g): one wide sigmoid slab + one tanh slab;
        # every slice below starts on a 128-lane boundary.
        sig = jax.nn.sigmoid(gates[:, :3 * Hp])
        i_g = sig[:, 0 * Hp:1 * Hp]
        f_g = sig[:, 1 * Hp:2 * Hp]
        o_g = sig[:, 2 * Hp:3 * Hp]
        g_g = jnp.tanh(gates[:, 3 * Hp:])
        c = f_g * c + i_g * g_g
        h = o_g * jnp.tanh(c)
        return (h, c)

    h_last, _ = jax.lax.fori_loop(0, T, step, (h0, c0), unroll=min(T, 8))

    # Epilogue: final linear layer on the last hidden state (lane-padded O).
    out_ref[...] = (
        jnp.dot(h_last.astype(mxu_dtype), wfc_ref[...],
                preferred_element_type=jnp.float32)
        + bfc_ref[...]).astype(out_ref.dtype)


def prepare_params(w_ih, w_hh, b_ih, b_hh, w_fc, b_fc, *,
                   compute_dtype=jnp.bfloat16):
    """Convert PyTorch-layout weights into the kernel layout.

    PyTorch layouts: w_ih (4H, I), w_hh (4H, H) with gate rows (i, f, g, o),
    w_fc (O, H).  Kernel layout: transposed, gate order (i, f, o, g), each gate
    column block zero-padded to Hp = round_up(H, 128) lanes, FC padded to
    Op = round_up(O, 128).  Matmul operands cast once to `compute_dtype`;
    biases stay f32 (added after f32 accumulation).
    """
    H4, I = w_ih.shape
    H = H4 // 4
    O = w_fc.shape[0]
    Hp = _round_up(max(H, 1), 128)
    Op = _round_up(max(O, 1), 128)

    def reorder(w):                       # (4H, X), PyTorch gate rows (i,f,g,o)
        i, f, g, o = jnp.split(w, 4, axis=0)
        return (i, f, o, g)               # sigmoid gates first, tanh gate last

    def pack(blocks, rows, rows_pad):     # -> (rows_pad, 4*Hp)
        out = jnp.zeros((rows_pad, 4 * Hp), jnp.float32)
        for k, blk in enumerate(blocks):
            out = out.at[:rows, k * Hp:k * Hp + H].set(jnp.transpose(blk))
        return out

    w_ih_t = pack(reorder(w_ih), I, I)                          # (I, 4Hp)
    w_hh_t = pack(reorder(w_hh), H, Hp)                         # (Hp, 4Hp)

    b = jnp.zeros((1, 4 * Hp), jnp.float32)
    for k, blk in enumerate(reorder((b_ih + b_hh).reshape(4 * H, 1))):
        b = b.at[0, k * Hp:k * Hp + H].set(blk[:, 0])

    w_fc_t = jnp.zeros((Hp, Op), jnp.float32).at[:H, :O].set(jnp.transpose(w_fc))
    b_fc_p = jnp.zeros((1, Op), jnp.float32).at[0, :O].set(b_fc)

    return dict(
        w_ih_t=w_ih_t.astype(compute_dtype),
        w_hh_t=w_hh_t.astype(compute_dtype),
        b_gates=b,
        w_fc_t=w_fc_t.astype(compute_dtype),
        b_fc=b_fc_p,
        hidden_size=H,
        output_size=O,
    )


def lstm_model_forward(x, params):
    """x: (B, T, I) float32.  Returns logits (B, O) float32."""
    w_ih_t, w_hh_t = params["w_ih_t"], params["w_hh_t"]
    b_gates, w_fc_t, b_fc = params["b_gates"], params["w_fc_t"], params["b_fc"]
    O = params["output_size"]

    B, T, I = x.shape
    Hp4 = w_hh_t.shape[1]
    Op = w_fc_t.shape[1]

    # Pad batch to the sublane count (8) so every (B, *) slab is sublane-dense;
    # padded rows are independent and sliced off afterwards.
    B_pad = max(8, _round_up(B, 8))
    x_tbi = jnp.transpose(x, (1, 0, 2))                        # (T, B, I)
    if B_pad != B:
        x_tbi = jnp.pad(x_tbi, ((0, 0), (0, B_pad - B), (0, 0)))
    x_flat = x_tbi.reshape(T * B_pad, I).astype(w_ih_t.dtype)  # time-major rows

    # Explicit VMEM budget (review: v5e scoped default is only 16 MiB; v7x has
    # 64 MiB physical — cap there).
    nbytes = lambda a: a.size * a.dtype.itemsize
    resident = (nbytes(x_flat) + nbytes(w_ih_t) + nbytes(w_hh_t)
                + nbytes(b_gates) + nbytes(w_fc_t) + nbytes(b_fc)
                + B_pad * Op * 4                # output
                + T * B_pad * Hp4 * 4)          # xproj scratch (f32)
    vmem_limit = int(min(max(2 * resident + (4 << 20), 16 << 20), 64 << 20))

    out_padded = pl.pallas_call(
        _lstm_fc_kernel,
        out_shape=jax.ShapeDtypeStruct((B_pad, Op), jnp.float32),
        # Single invocation, nothing to pipeline: keep whole arrays resident in
        # VMEM with no block pipelining / double-buffering.
        in_specs=[pl.BlockSpec(memory_space=pltpu.MemorySpace.VMEM)] * 6,
        out_specs=pl.BlockSpec(memory_space=pltpu.MemorySpace.VMEM),
        scratch_shapes=[pltpu.VMEM((T * B_pad, Hp4), jnp.float32)],
        compiler_params=pltpu.CompilerParams(vmem_limit_bytes=vmem_limit),
    )(x_flat, w_ih_t, w_hh_t, b_gates, w_fc_t, b_fc)

    return out_padded[:B, :O]


def init_params(key, input_size, hidden_size, output_size):
    """Deterministic synthetic weights in PyTorch layout, U(-1/sqrt(H), 1/sqrt(H))."""
    ks = jax.random.split(key, 6)
    bound = 1.0 / np.sqrt(hidden_size)
    u = lambda k, shape: jax.random.uniform(k, shape, jnp.float32, -bound, bound)
    w_ih = u(ks[0], (4 * hidden_size, input_size))   # weight_ih_l0
    w_hh = u(ks[1], (4 * hidden_size, hidden_size))  # weight_hh_l0
    b_ih = u(ks[2], (4 * hidden_size,))
    b_hh = u(ks[3], (4 * hidden_size,))
    w_fc = u(ks[4], (output_size, hidden_size))      # fc.weight
    b_fc = u(ks[5], (output_size,))
    return (w_ih, w_hh, b_ih, b_hh, w_fc, b_fc)


def reference_forward(x, torch_params, *, matmul_dtype=jnp.float32):
    """Pure-JAX reference: nn.LSTM(batch_first) + fc on last step.

    matmul_dtype mirrors the kernel's MXU operand dtype (f32 exact or bf16).
    """
    w_ih, w_hh, b_ih, b_hh, w_fc, b_fc = torch_params
    B, T, I = x.shape
    H = w_hh.shape[1]
    w_ih_t = jnp.transpose(w_ih).astype(matmul_dtype)
    w_hh_t = jnp.transpose(w_hh).astype(matmul_dtype)
    w_fc_t = jnp.transpose(w_fc).astype(matmul_dtype)
    b = (b_ih + b_hh)[None, :]

    def step(carry, x_t):
        h, c = carry
        gates = (jnp.dot(x_t.astype(matmul_dtype), w_ih_t,
                         preferred_element_type=jnp.float32)
                 + jnp.dot(h.astype(matmul_dtype), w_hh_t,
                           preferred_element_type=jnp.float32)
                 + b)
        i_g = jax.nn.sigmoid(gates[:, 0 * H:1 * H])
        f_g = jax.nn.sigmoid(gates[:, 1 * H:2 * H])
        g_g = jnp.tanh(gates[:, 2 * H:3 * H])
        o_g = jax.nn.sigmoid(gates[:, 3 * H:4 * H])
        c = f_g * c + i_g * g_g
        h = o_g * jnp.tanh(c)
        return (h, c), None

    h0 = jnp.zeros((B, H), jnp.float32)
    c0 = jnp.zeros((B, H), jnp.float32)
    (h_last, _), _ = jax.lax.scan(step, (h0, c0), jnp.transpose(x, (1, 0, 2)))
    return (jnp.dot(h_last.astype(matmul_dtype), w_fc_t,
                    preferred_element_type=jnp.float32) + b_fc[None, :])


if __name__ == "__main__":
    batch, seq, input_size, hidden_size, output_size = 2, 8, 16, 32, 8

    key = jax.random.PRNGKey(0)
    k_x, k_p = jax.random.split(key)
    x = jax.random.normal(k_x, (batch, seq, input_size), jnp.float32)
    torch_params = init_params(k_p, input_size, hidden_size, output_size)

    # Exact-f32 fallback path: matches the PyTorch/JAX f32 reference tightly.
    params_f32 = prepare_params(*torch_params, compute_dtype=jnp.float32)
    out_f32 = jax.block_until_ready(lstm_model_forward(x, params_f32))
    ref_f32 = reference_forward(x, torch_params, matmul_dtype=jnp.float32)
    np.testing.assert_allclose(np.asarray(out_f32), np.asarray(ref_f32),
                               rtol=1e-5, atol=1e-5)

    # Fast path (default): bf16 MXU operands with f32 accumulation.
    params_bf16 = prepare_params(*torch_params, compute_dtype=jnp.bfloat16)
    out_bf16 = jax.block_until_ready(lstm_model_forward(x, params_bf16))
    ref_bf16 = reference_forward(x, torch_params, matmul_dtype=jnp.bfloat16)
    np.testing.assert_allclose(np.asarray(out_bf16), np.asarray(ref_bf16),
                               rtol=5e-3, atol=5e-3)
    # Sanity against the exact f32 reference (bf16 MXU deviates slightly by design).
    np.testing.assert_allclose(np.asarray(out_bf16), np.asarray(ref_f32),
                               rtol=5e-2, atol=5e-2)

    print("KERNEL_OK")
</pallas_src>

<mosaic_0001>
module attributes {stable_mosaic.version = 11 : i64} {
  func.func @_lstm_fc_kernel(%arg0: memref<64x16xf32, #tpu.memory_space<vmem>>, %arg1: memref<16x512xf32, #tpu.memory_space<vmem>>, %arg2: memref<128x512xf32, #tpu.memory_space<vmem>>, %arg3: memref<1x512xf32, #tpu.memory_space<vmem>>, %arg4: memref<128x128xf32, #tpu.memory_space<vmem>>, %arg5: memref<1x128xf32, #tpu.memory_space<vmem>>, %arg6: memref<8x128xf32, #tpu.memory_space<vmem>>, %arg7: memref<64x512xf32, #tpu.memory_space<vmem>>) attributes {dimension_semantics = [], scalar_prefetch = 0 : i64, scratch_operands = 1 : i64, tpu.core_type = #tpu.core_type<tc>} {
    %c0 = arith.constant 0 : index
    %c0_0 = arith.constant 0 : index
    %0 = vector.load %arg0[%c0, %c0_0] : memref<64x16xf32, #tpu.memory_space<vmem>>, vector<64x16xf32>
    %c0_1 = arith.constant 0 : index
    %c0_2 = arith.constant 0 : index
    %1 = vector.load %arg1[%c0_1, %c0_2] : memref<16x512xf32, #tpu.memory_space<vmem>>, vector<16x512xf32>
    %cst = arith.constant dense<0.000000e+00> : vector<64x512xf32>
    %2 = tpu.matmul %0, %1, %cst {dimension_numbers = #tpu.dot_dimension_numbers<[1], [0], [0], [1], [0, 0, 1, 1], [], []>} : vector<64x16xf32>, vector<16x512xf32>, vector<64x512xf32> -> vector<64x512xf32>
    %c0_3 = arith.constant 0 : index
    %c0_4 = arith.constant 0 : index
    %3 = vector.load %arg3[%c0_3, %c0_4] : memref<1x512xf32, #tpu.memory_space<vmem>>, vector<1x512xf32>
    %4 = vector.broadcast %3 : vector<1x512xf32> to vector<64x512xf32>
    %5 = arith.addf %2, %4 : vector<64x512xf32>
    %c0_5 = arith.constant 0 : index
    %c0_6 = arith.constant 0 : index
    %6 = vector.load %arg7[%c0_5, %c0_6] : memref<64x512xf32, #tpu.memory_space<vmem>>, vector<64x512xf32>
    tpu.vector_store %arg7[%c0_5, %c0_6], %5 {strides = array<i32>} : memref<64x512xf32, #tpu.memory_space<vmem>>, vector<64x512xf32>,
    %c0_7 = arith.constant 0 : index
    %c0_8 = arith.constant 0 : index
    %7 = vector.load %arg2[%c0_7, %c0_8] : memref<128x512xf32, #tpu.memory_space<vmem>>, vector<128x512xf32>
    %cst_9 = arith.constant 0.000000e+00 : f32
    %8 = vector.broadcast %cst_9 : f32 to vector<8x128xf32>
    %cst_10 = arith.constant 0.000000e+00 : f32
    %9 = vector.broadcast %cst_10 : f32 to vector<8x128xf32>
    %c0_i32 = arith.constant 0 : i32
    %c8_i32 = arith.constant 8 : i32
    %10 = arith.muli %c0_i32, %c8_i32 : i32
    %11 = tpu.assume_multiple %10, 8 : i32
    %12 = arith.index_cast %11 : i32 to index
    %c0_11 = arith.constant 0 : index
    %13 = vector.load %arg7[%12, %c0_11] : memref<64x512xf32, #tpu.memory_space<vmem>>, vector<8x512xf32>
    %cst_12 = arith.constant dense<0.000000e+00> : vector<8x512xf32>
    %14 = tpu.matmul %8, %7, %cst_12 {dimension_numbers = #tpu.dot_dimension_numbers<[1], [0], [0], [1], [0, 0, 1, 1], [], []>} : vector<8x128xf32>, vector<128x512xf32>, vector<8x512xf32> -> vector<8x512xf32>
    %15 = arith.addf %13, %14 : vector<8x512xf32>
    %16 = vector.extract_strided_slice %15 {offsets = [0, 0], sizes = [8, 384], strides = [1, 1]} : vector<8x512xf32> to vector<8x384xf32>
    %17 = arith.negf %16 : vector<8x384xf32>
    %18 = math.exp %17 : vector<8x384xf32>
    %cst_13 = arith.constant 1.000000e+00 : f32
    %19 = vector.broadcast %cst_13 : f32 to vector<8x384xf32>
    %20 = arith.addf %19, %18 : vector<8x384xf32>
    %21 = arith.divf %19, %20 : vector<8x384xf32>
    %22 = vector.extract_strided_slice %21 {offsets = [0, 0], sizes = [8, 128], strides = [1, 1]} : vector<8x384xf32> to vector<8x128xf32>
    %23 = vector.extract_strided_slice %21 {offsets = [0, 128], sizes = [8, 128], strides = [1, 1]} : vector<8x384xf32> to vector<8x128xf32>
    %24 = vector.extract_strided_slice %21 {offsets = [0, 256], sizes = [8, 128], strides = [1, 1]} : vector<8x384xf32> to vector<8x128xf32>
    %25 = vector.extract_strided_slice %15 {offsets = [0, 384], sizes = [8, 128], strides = [1, 1]} : vector<8x512xf32> to vector<8x128xf32>
    %26 = math.tanh %25 : vector<8x128xf32>
    %27 = arith.mulf %23, %9 : vector<8x128xf32>
    %28 = arith.mulf %22, %26 : vector<8x128xf32>
    %29 = arith.addf %27, %28 : vector<8x128xf32>
    %30 = math.tanh %29 : vector<8x128xf32>
    %31 = arith.mulf %24, %30 : vector<8x128xf32>
    %c1_i32 = arith.constant 1 : i32
    %c8_i32_14 = arith.constant 8 : i32
    %32 = arith.muli %c1_i32, %c8_i32_14 : i32
    %33 = tpu.assume_multiple %32, 8 : i32
    %34 = arith.index_cast %33 : i32 to index
    %c0_15 = arith.constant 0 : index
    %35 = vector.load %arg7[%34, %c0_15] : memref<64x512xf32, #tpu.memory_space<vmem>>, vector<8x512xf32>
    %cst_16 = arith.constant dense<0.000000e+00> : vector<8x512xf32>
    %36 = tpu.matmul %31, %7, %cst_16 {dimension_numbers = #tpu.dot_dimension_numbers<[1], [0], [0], [1], [0, 0, 1, 1], [], []>} : vector<8x128xf32>, vector<128x512xf32>, vector<8x512xf32> -> vector<8x512xf32>
    %37 = arith.addf %35, %36 : vector<8x512xf32>
    %38 = vector.extract_strided_slice %37 {offsets = [0, 0], sizes = [8, 384], strides = [1, 1]} : vector<8x512xf32> to vector<8x384xf32>
    %39 = arith.negf %38 : vector<8x384xf32>
    %40 = math.exp %39 : vector<8x384xf32>
    %cst_17 = arith.constant 1.000000e+00 : f32
    %41 = vector.broadcast %cst_17 : f32 to vector<8x384xf32>
    %42 = arith.addf %41, %40 : vector<8x384xf32>
    %43 = arith.divf %41, %42 : vector<8x384xf32>
    %44 = vector.extract_strided_slice %43 {offsets = [0, 0], sizes = [8, 128], strides = [1, 1]} : vector<8x384xf32> to vector<8x128xf32>
    %45 = vector.extract_strided_slice %43 {offsets = [0, 128], sizes = [8, 128], strides = [1, 1]} : vector<8x384xf32> to vector<8x128xf32>
    %46 = vector.extract_strided_slice %43 {offsets = [0, 256], sizes = [8, 128], strides = [1, 1]} : vector<8x384xf32> to vector<8x128xf32>
    %47 = vector.extract_strided_slice %37 {offsets = [0, 384], sizes = [8, 128], strides = [1, 1]} : vector<8x512xf32> to vector<8x128xf32>
    %48 = math.tanh %47 : vector<8x128xf32>
    %49 = arith.mulf %45, %29 : vector<8x128xf32>
    %50 = arith.mulf %44, %48 : vector<8x128xf32>
    %51 = arith.addf %49, %50 : vector<8x128xf32>
    %52 = math.tanh %51 : vector<8x128xf32>
    %53 = arith.mulf %46, %52 : vector<8x128xf32>
    %c2_i32 = arith.constant 2 : i32
    %c8_i32_18 = arith.constant 8 : i32
    %54 = arith.muli %c2_i32, %c8_i32_18 : i32
    %55 = tpu.assume_multiple %54, 8 : i32
    %56 = arith.index_cast %55 : i32 to index
    %c0_19 = arith.constant 0 : index
    %57 = vector.load %arg7[%56, %c0_19] : memref<64x512xf32, #tpu.memory_space<vmem>>, vector<8x512xf32>
    %cst_20 = arith.constant dense<0.000000e+00> : vector<8x512xf32>
    %58 = tpu.matmul %53, %7, %cst_20 {dimension_numbers = #tpu.dot_dimension_numbers<[1], [0], [0], [1], [0, 0, 1, 1], [], []>} : vector<8x128xf32>, vector<128x512xf32>, vector<8x512xf32> -> vector<8x512xf32>
    %59 = arith.addf %57, %58 : vector<8x512xf32>
    %60 = vector.extract_strided_slice %59 {offsets = [0, 0], sizes = [8, 384], strides = [1, 1]} : vector<8x512xf32> to vector<8x384xf32>
    %61 = arith.negf %60 : vector<8x384xf32>
    %62 = math.exp %61 : vector<8x384xf32>
    %cst_21 = arith.constant 1.000000e+00 : f32
    %63 = vector.broadcast %cst_21 : f32 to vector<8x384xf32>
    %64 = arith.addf %63, %62 : vector<8x384xf32>
    %65 = arith.divf %63, %64 : vector<8x384xf32>
    %66 = vector.extract_strided_slice %65 {offsets = [0, 0], sizes = [8, 128], strides = [1, 1]} : vector<8x384xf32> to vector<8x128xf32>
    %67 = vector.extract_strided_slice %65 {offsets = [0, 128], sizes = [8, 128], strides = [1, 1]} : vector<8x384xf32> to vector<8x128xf32>
    %68 = vector.extract_strided_slice %65 {offsets = [0, 256], sizes = [8, 128], strides = [1, 1]} : vector<8x384xf32> to vector<8x128xf32>
    %69 = vector.extract_strided_slice %59 {offsets = [0, 384], sizes = [8, 128], strides = [1, 1]} : vector<8x512xf32> to vector<8x128xf32>
    %70 = math.tanh %69 : vector<8x128xf32>
    %71 = arith.mulf %67, %51 : vector<8x128xf32>
    %72 = arith.mulf %66, %70 : vector<8x128xf32>
    %73 = arith.addf %71, %72 : vector<8x128xf32>
    %74 = math.tanh %73 : vector<8x128xf32>
    %75 = arith.mulf %68, %74 : vector<8x128xf32>
    %c3_i32 = arith.constant 3 : i32
    %c8_i32_22 = arith.constant 8 : i32
    %76 = arith.muli %c3_i32, %c8_i32_22 : i32
    %77 = tpu.assume_multiple %76, 8 : i32
    %78 = arith.index_cast %77 : i32 to index
    %c0_23 = arith.constant 0 : index
    %79 = vector.load %arg7[%78, %c0_23] : memref<64x512xf32, #tpu.memory_space<vmem>>, vector<8x512xf32>
    %cst_24 = arith.constant dense<0.000000e+00> : vector<8x512xf32>
    %80 = tpu.matmul %75, %7, %cst_24 {dimension_numbers = #tpu.dot_dimension_numbers<[1], [0], [0], [1], [0, 0, 1, 1], [], []>} : vector<8x128xf32>, vector<128x512xf32>, vector<8x512xf32> -> vector<8x512xf32>
    %81 = arith.addf %79, %80 : vector<8x512xf32>
    %82 = vector.extract_strided_slice %81 {offsets = [0, 0], sizes = [8, 384], strides = [1, 1]} : vector<8x512xf32> to vector<8x384xf32>
    %83 = arith.negf %82 : vector<8x384xf32>
    %84 = math.exp %83 : vector<8x384xf32>
    %cst_25 = arith.constant 1.000000e+00 : f32
    %85 = vector.broadcast %cst_25 : f32 to vector<8x384xf32>
    %86 = arith.addf %85, %84 : vector<8x384xf32>
    %87 = arith.divf %85, %86 : vector<8x384xf32>
    %88 = vector.extract_strided_slice %87 {offsets = [0, 0], sizes = [8, 128], strides = [1, 1]} : vector<8x384xf32> to vector<8x128xf32>
    %89 = vector.extract_strided_slice %87 {offsets = [0, 128], sizes = [8, 128], strides = [1, 1]} : vector<8x384xf32> to vector<8x128xf32>
    %90 = vector.extract_strided_slice %87 {offsets = [0, 256], sizes = [8, 128], strides = [1, 1]} : vector<8x384xf32> to vector<8x128xf32>
    %91 = vector.extract_strided_slice %81 {offsets = [0, 384], sizes = [8, 128], strides = [1, 1]} : vector<8x512xf32> to vector<8x128xf32>
    %92 = math.tanh %91 : vector<8x128xf32>
    %93 = arith.mulf %89, %73 : vector<8x128xf32>
    %94 = arith.mulf %88, %92 : vector<8x128xf32>
    %95 = arith.addf %93, %94 : vector<8x128xf32>
    %96 = math.tanh %95 : vector<8x128xf32>
    %97 = arith.mulf %90, %96 : vector<8x128xf32>
    %c4_i32 = arith.constant 4 : i32
    %c8_i32_26 = arith.constant 8 : i32
    %98 = arith.muli %c4_i32, %c8_i32_26 : i32
    %99 = tpu.assume_multiple %98, 8 : i32
    %100 = arith.index_cast %99 : i32 to index
    %c0_27 = arith.constant 0 : index
    %101 = vector.load %arg7[%100, %c0_27] : memref<64x512xf32, #tpu.memory_space<vmem>>, vector<8x512xf32>
    %cst_28 = arith.constant dense<0.000000e+00> : vector<8x512xf32>
    %102 = tpu.matmul %97, %7, %cst_28 {dimension_numbers = #tpu.dot_dimension_numbers<[1], [0], [0], [1], [0, 0, 1, 1], [], []>} : vector<8x128xf32>, vector<128x512xf32>, vector<8x512xf32> -> vector<8x512xf32>
    %103 = arith.addf %101, %102 : vector<8x512xf32>
    %104 = vector.extract_strided_slice %103 {offsets = [0, 0], sizes = [8, 384], strides = [1, 1]} : vector<8x512xf32> to vector<8x384xf32>
    %105 = arith.negf %104 : vector<8x384xf32>
    %106 = math.exp %105 : vector<8x384xf32>
    %cst_29 = arith.constant 1.000000e+00 : f32
    %107 = vector.broadcast %cst_29 : f32 to vector<8x384xf32>
    %108 = arith.addf %107, %106 : vector<8x384xf32>
    %109 = arith.divf %107, %108 : vector<8x384xf32>
    %110 = vector.extract_strided_slice %109 {offsets = [0, 0], sizes = [8, 128], strides = [1, 1]} : vector<8x384xf32> to vector<8x128xf32>
    %111 = vector.extract_strided_slice %109 {offsets = [0, 128], sizes = [8, 128], strides = [1, 1]} : vector<8x384xf32> to vector<8x128xf32>
    %112 = vector.extract_strided_slice %109 {offsets = [0, 256], sizes = [8, 128], strides = [1, 1]} : vector<8x384xf32> to vector<8x128xf32>
    %113 = vector.extract_strided_slice %103 {offsets = [0, 384], sizes = [8, 128], strides = [1, 1]} : vector<8x512xf32> to vector<8x128xf32>
    %114 = math.tanh %113 : vector<8x128xf32>
    %115 = arith.mulf %111, %95 : vector<8x128xf32>
    %116 = arith.mulf %110, %114 : vector<8x128xf32>
    %117 = arith.addf %115, %116 : vector<8x128xf32>
    %118 = math.tanh %117 : vector<8x128xf32>
    %119 = arith.mulf %112, %118 : vector<8x128xf32>
    %c5_i32 = arith.constant 5 : i32
    %c8_i32_30 = arith.constant 8 : i32
    %120 = arith.muli %c5_i32, %c8_i32_30 : i32
    %121 = tpu.assume_multiple %120, 8 : i32
    %122 = arith.index_cast %121 : i32 to index
    %c0_31 = arith.constant 0 : index
    %123 = vector.load %arg7[%122, %c0_31] : memref<64x512xf32, #tpu.memory_space<vmem>>, vector<8x512xf32>
    %cst_32 = arith.constant dense<0.000000e+00> : vector<8x512xf32>
    %124 = tpu.matmul %119, %7, %cst_32 {dimension_numbers = #tpu.dot_dimension_numbers<[1], [0], [0], [1], [0, 0, 1, 1], [], []>} : vector<8x128xf32>, vector<128x512xf32>, vector<8x512xf32> -> vector<8x512xf32>
    %125 = arith.addf %123, %124 : vector<8x512xf32>
    %126 = vector.extract_strided_slice %125 {offsets = [0, 0], sizes = [8, 384], strides = [1, 1]} : vector<8x512xf32> to vector<8x384xf32>
    %127 = arith.negf %126 : vector<8x384xf32>
    %128 = math.exp %127 : vector<8x384xf32>
    %cst_33 = arith.constant 1.000000e+00 : f32
    %129 = vector.broadcast %cst_33 : f32 to vector<8x384xf32>
    %130 = arith.addf %129, %128 : vector<8x384xf32>
    %131 = arith.divf %129, %130 : vector<8x384xf32>
    %132 = vector.extract_strided_slice %131 {offsets = [0, 0], sizes = [8, 128], strides = [1, 1]} : vector<8x384xf32> to vector<8x128xf32>
    %133 = vector.extract_strided_slice %131 {offsets = [0, 128], sizes = [8, 128], strides = [1, 1]} : vector<8x384xf32> to vector<8x128xf32>
    %134 = vector.extract_strided_slice %131 {offsets = [0, 256], sizes = [8, 128], strides = [1, 1]} : vector<8x384xf32> to vector<8x128xf32>
    %135 = vector.extract_strided_slice %125 {offsets = [0, 384], sizes = [8, 128], strides = [1, 1]} : vector<8x512xf32> to vector<8x128xf32>
    %136 = math.tanh %135 : vector<8x128xf32>
    %137 = arith.mulf %133, %117 : vector<8x128xf32>
    %138 = arith.mulf %132, %136 : vector<8x128xf32>
    %139 = arith.addf %137, %138 : vector<8x128xf32>
    %140 = math.tanh %139 : vector<8x128xf32>
    %141 = arith.mulf %134, %140 : vector<8x128xf32>
    %c6_i32 = arith.constant 6 : i32
    %c8_i32_34 = arith.constant 8 : i32
    %142 = arith.muli %c6_i32, %c8_i32_34 : i32
    %143 = tpu.assume_multiple %142, 8 : i32
    %144 = arith.index_cast %143 : i32 to index
    %c0_35 = arith.constant 0 : index
    %145 = vector.load %arg7[%144, %c0_35] : memref<64x512xf32, #tpu.memory_space<vmem>>, vector<8x512xf32>
    %cst_36 = arith.constant dense<0.000000e+00> : vector<8x512xf32>
    %146 = tpu.matmul %141, %7, %cst_36 {dimension_numbers = #tpu.dot_dimension_numbers<[1], [0], [0], [1], [0, 0, 1, 1], [], []>} : vector<8x128xf32>, vector<128x512xf32>, vector<8x512xf32> -> vector<8x512xf32>
    %147 = arith.addf %145, %146 : vector<8x512xf32>
    %148 = vector.extract_strided_slice %147 {offsets = [0, 0], sizes = [8, 384], strides = [1, 1]} : vector<8x512xf32> to vector<8x384xf32>
    %149 = arith.negf %148 : vector<8x384xf32>
    %150 = math.exp %149 : vector<8x384xf32>
    %cst_37 = arith.constant 1.000000e+00 : f32
    %151 = vector.broadcast %cst_37 : f32 to vector<8x384xf32>
    %152 = arith.addf %151, %150 : vector<8x384xf32>
    %153 = arith.divf %151, %152 : vector<8x384xf32>
    %154 = vector.extract_strided_slice %153 {offsets = [0, 0], sizes = [8, 128], strides = [1, 1]} : vector<8x384xf32> to vector<8x128xf32>
    %155 = vector.extract_strided_slice %153 {offsets = [0, 128], sizes = [8, 128], strides = [1, 1]} : vector<8x384xf32> to vector<8x128xf32>
    %156 = vector.extract_strided_slice %153 {offsets = [0, 256], sizes = [8, 128], strides = [1, 1]} : vector<8x384xf32> to vector<8x128xf32>
    %157 = vector.extract_strided_slice %147 {offsets = [0, 384], sizes = [8, 128], strides = [1, 1]} : vector<8x512xf32> to vector<8x128xf32>
    %158 = math.tanh %157 : vector<8x128xf32>
    %159 = arith.mulf %155, %139 : vector<8x128xf32>
    %160 = arith.mulf %154, %158 : vector<8x128xf32>
    %161 = arith.addf %159, %160 : vector<8x128xf32>
    %162 = math.tanh %161 : vector<8x128xf32>
    %163 = arith.mulf %156, %162 : vector<8x128xf32>
    %c7_i32 = arith.constant 7 : i32
    %c8_i32_38 = arith.constant 8 : i32
    %164 = arith.muli %c7_i32, %c8_i32_38 : i32
    %165 = tpu.assume_multiple %164, 8 : i32
    %166 = arith.index_cast %165 : i32 to index
    %c0_39 = arith.constant 0 : index
    %167 = vector.load %arg7[%166, %c0_39] : memref<64x512xf32, #tpu.memory_space<vmem>>, vector<8x512xf32>
    %cst_40 = arith.constant dense<0.000000e+00> : vector<8x512xf32>
    %168 = tpu.matmul %163, %7, %cst_40 {dimension_numbers = #tpu.dot_dimension_numbers<[1], [0], [0], [1], [0, 0, 1, 1], [], []>} : vector<8x128xf32>, vector<128x512xf32>, vector<8x512xf32> -> vector<8x512xf32>
    %169 = arith.addf %167, %168 : vector<8x512xf32>
    %170 = vector.extract_strided_slice %169 {offsets = [0, 0], sizes = [8, 384], strides = [1, 1]} : vector<8x512xf32> to vector<8x384xf32>
    %171 = arith.negf %170 : vector<8x384xf32>
    %172 = math.exp %171 : vector<8x384xf32>
    %cst_41 = arith.constant 1.000000e+00 : f32
    %173 = vector.broadcast %cst_41 : f32 to vector<8x384xf32>
    %174 = arith.addf %173, %172 : vector<8x384xf32>
    %175 = arith.divf %173, %174 : vector<8x384xf32>
    %176 = vector.extract_strided_slice %175 {offsets = [0, 0], sizes = [8, 128], strides = [1, 1]} : vector<8x384xf32> to vector<8x128xf32>
    %177 = vector.extract_strided_slice %175 {offsets = [0, 128], sizes = [8, 128], strides = [1, 1]} : vector<8x384xf32> to vector<8x128xf32>
    %178 = vector.extract_strided_slice %175 {offsets = [0, 256], sizes = [8, 128], strides = [1, 1]} : vector<8x384xf32> to vector<8x128xf32>
    %179 = vector.extract_strided_slice %169 {offsets = [0, 384], sizes = [8, 128], strides = [1, 1]} : vector<8x512xf32> to vector<8x128xf32>
    %180 = math.tanh %179 : vector<8x128xf32>
    %181 = arith.mulf %177, %161 : vector<8x128xf32>
    %182 = arith.mulf %176, %180 : vector<8x128xf32>
    %183 = arith.addf %181, %182 : vector<8x128xf32>
    %184 = math.tanh %183 : vector<8x128xf32>
    %185 = arith.mulf %178, %184 : vector<8x128xf32>
    %c8_i32_42 = arith.constant 8 : i32
    %c0_43 = arith.constant 0 : index
    %c0_44 = arith.constant 0 : index
    %186 = vector.load %arg4[%c0_43, %c0_44] : memref<128x128xf32, #tpu.memory_space<vmem>>, vector<128x128xf32>
    %cst_45 = arith.constant dense<0.000000e+00> : vector<8x128xf32>
    %187 = tpu.matmul %185, %186, %cst_45 {dimension_numbers = #tpu.dot_dimension_numbers<[1], [0], [0], [1], [0, 0, 1, 1], [], []>} : vector<8x128xf32>, vector<128x128xf32>, vector<8x128xf32> -> vector<8x128xf32>
    %c0_46 = arith.constant 0 : index
    %c0_47 = arith.constant 0 : index
    %188 = vector.load %arg5[%c0_46, %c0_47] : memref<1x128xf32, #tpu.memory_space<vmem>>, vector<1x128xf32>
    %189 = vector.broadcast %188 : vector<1x128xf32> to vector<8x128xf32>
    %190 = arith.addf %187, %189 : vector<8x128xf32>
    %c0_48 = arith.constant 0 : index
    %c0_49 = arith.constant 0 : index
    %191 = vector.load %arg6[%c0_48, %c0_49] : memref<8x128xf32, #tpu.memory_space<vmem>>, vector<8x128xf32>
    tpu.vector_store %arg6[%c0_48, %c0_49], %190 {strides = array<i32>} : memref<8x128xf32, #tpu.memory_space<vmem>>, vector<8x128xf32>,
    return
  }
}

</mosaic_0001>

<bundles_post_ra>
// kernel: tpu_custom_call.1
= control target key start
LH: loop header
LB: loop body
LE: loop exit
PB: predicated region body
PF: predicated region fallthrough
CT: control target
= control target key end

     0   :  { %11 = vsyncpa [#allocation4], 0  ;;  %s3455_s0 = inlined_call_operand.vmem [shape: f32[64,16], index: 0, kind: input, shape index: {}]   ;;  %s3456_s1 = inlined_call_operand.vmem [shape: f32[16,512], index: 1, kind: input, shape index: {}]   ;;  %s3457_s2 = inlined_call_operand.hbm [shape: f32[128,512], index: 2, kind: input, shape index: {}]   ;;  %s3458_s3 = inlined_call_operand.vmem [shape: f32[1,512], index: 3, kind: input, shape index: {}]   ;;  %s3459_s4 = inlined_call_operand.hbm [shape: f32[128,128], index: 4, kind: input, shape index: {}]   ;;  %s3460_s5 = inlined_call_operand.vmem [shape: f32[1,128], index: 5, kind: input, shape index: {}]   ;;  %s3461_s6 = inlined_call_operand.hbm [shape: f32[8,128], index: 6, kind: output, shape index: {}]  }
   0x1   :  { %12 = vsyncpa [#allocation7], 0 }
   0x2   :  { %13 = vsyncpa [#allocation5], 0  ;;  %s2881_s21 = smov [#allocation3]   ;;  %s2809_s25 = scalar_lea.hbm %s3457_s2, 8192 }
   0x3   :  { %s23_s22 = sshll.u32 %s2881_s21, 4  ;;  %p2810_p0 = scmp.ne.s32.totalorder %s3457_s2, %s2809_s25  ;;  %s24_s22 = int_to_ptr.vmem [resolvable:$true] %s23_s22 }
   0x4   :  { %p2813_p1 = scmp.lt.u32.totalorder %s2809_s25, %s3457_s2 }
   0x6   :  { %p2815_p2 = pnand %p2813_p1, %p2810_p0 }
   0x8   :  { %2818 = shalt.err (!%p2815_p2)
}
   0x9   :  { %s2819_s30 = scalar_lea.vmem %s24_s22, 8192  ;;  %p2824_p4 = scmp.lt.s32.totalorder %s24_s22, %s24_s22 }
   0xa   :  { %p2820_p3 = scmp.ne.s32.totalorder %s24_s22, %s2819_s30  ;;  %p2825_p5 = scmp.lt.s32.totalorder %s2819_s30, %s2819_s30 }
   0xc   :  { %p2826_p6 = por %p2825_p5, %p2824_p4 }
   0xe   :  { %p2827_p7 = pnand %p2826_p6, %p2820_p3 }
  0x10   :  { %2830 = shalt.err (!%p2827_p7)
}
  0x11   :  { %s2882_s7 = smov 512   ;;  %s2883_s8 = smov 32  }
  0x12   :  { %29 = dma.hbm_to_vmem [thread:$0]  %s3457_s2, 8192, %s24_s22, [#allocation4], %s2882_s7, %s2882_s7, %s2883_s8  }
  0x13   :  { %s2884_s11 = smov [#allocation6]   ;;  %s2831_s15 = scalar_lea.hbm %s3459_s4, 2048 }
  0x14   :  { %s37_s12 = sshll.u32 %s2884_s11, 4  ;;  %p2832_p8 = scmp.ne.s32.totalorder %s3459_s4, %s2831_s15  ;;  %s38_s12 = int_to_ptr.vmem [resolvable:$true] %s37_s12 }
  0x15   :  { %p2835_p9 = scmp.lt.u32.totalorder %s2831_s15, %s3459_s4 }
  0x17   :  { %p2837_p10 = pnand %p2835_p9, %p2832_p8 }
  0x19   :  { %2840 = shalt.err (!%p2837_p10)
}
  0x1a   :  { %s2841_s20 = scalar_lea.vmem %s38_s12, 2048  ;;  %p2846_p12 = scmp.lt.s32.totalorder %s38_s12, %s38_s12 }
  0x1b   :  { %p2842_p11 = scmp.ne.s32.totalorder %s38_s12, %s2841_s20  ;;  %p2847_p13 = scmp.lt.s32.totalorder %s2841_s20, %s2841_s20 }
  0x1d   :  { %p2848_p0 = por %p2847_p13, %p2846_p12 }
  0x1f   :  { %p2849_p1 = pnand %p2848_p0, %p2842_p11 }
  0x21   :  { %2852 = shalt.err (!%p2849_p1)
}
  0x22   :  { %s2885_s2 = smov 128   ;;  %s2886_s21 = smov 8  }
  0x23   :  { %43 = dma.hbm_to_vmem [thread:$0]  %s3459_s4, 2048, %s38_s12, [#allocation7], %s2885_s2, %s2885_s2, %s2886_s21  }
  0x24   :  { %2875 = dma.done.wait [#allocation4], 8192  }
  0x25   :  { %2876 = vsyncadd [#allocation4], 4294959104 }
  0x26   :  { %2877 = dma.done.wait [#allocation7], 2048  }
  0x27   :  { %2878 = vsyncadd [#allocation7], 4294965248  ;;  %v2887_v0 = vmov 0.0   ;;  %v61_v1 = vld [vmem:[%s3456_s1 + $0x8] sm:$0xff]  ;;  %v63_v3 = vld [vmem:[%s3456_s1 + $0x18] sm:$0xff]  ;;  %vm90_vm0 = vcmask 130048  }
  0x28   :  { %179 = vmatprep.mubr.f32.mxu0 %v2887_v0  ;;  %292 = vmatprep.mubr.f32.mxu1 %v2887_v0  ;;  %v65_v2 = vld [vmem:[%s3456_s1 + $0x28] sm:$0xff]  ;;  %v67_v5 = vld [vmem:[%s3456_s1 + $0x38] sm:$0xff]  ;;  %v60_v6 = vld [vmem:[%s3456_s1] sm:$0xff]  ;;  %vm2889_vm1 = vmmov 0   ;;  %s2890_s30 = smov [#allocation8]  }
  0x29   :  { %v2063_v4 = vpack.c.bf16 %v65_v2, %v61_v1  ;;  %v64_v7 = vld [vmem:[%s3456_s1 + $0x20] sm:$0xff]  ;;  %v2067_v8 = vpack.c.bf16 %v67_v5, %v63_v3  ;;  %v62_v10 = vld [vmem:[%s3456_s1 + $0x10] sm:$0xff]  ;;  %v374_v14 = vld [vmem:[#allocation3 + $0x8] sm:$0xff]  ;;  %s1953_s7 = sshll.u32 %s2890_s30, 4  ;;  %s1954_s7 = int_to_ptr.vmem [resolvable:$true] %s1953_s7 }
  0x2a   :  { %v2065_v9 = vpack.c.bf16 %v64_v7, %v60_v6  ;;  %v66_v11 = vld [vmem:[%s3456_s1 + $0x30] sm:$0xff]  ;;  %v52_v12 = vld [vmem:[%s3455_s0] sm:$0xff]  ;;  %v378_v15 = vld [vmem:[#allocation3 + $0x28] sm:$0xff]  ;;  %s2853_s8 = scalar_lea.vmem %s1954_s7, 128  ;;  %p2858_p3 = scmp.lt.s32.totalorder %s1954_s7, %s1954_s7 }
  0x2b   :  { %2064 = vmatprep.subr.bf16.mxu0 %v2063_v4  ;;  %v2069_v13 = vpack.c.bf16 %v66_v11, %v62_v10  ;;  %v376_v16 = vld [vmem:[#allocation3 + $0x18] sm:$0xff]  ;;  %2068 = vmatprep.subr.bf16.mxu1 %v2067_v8  ;;  %v2979_v17 = vpack.c.bf16 %v378_v15, %v374_v14  ;;  %v373_v19 = vld [vmem:[#allocation3] sm:$0xff]  ;;  %v375_v23 = vld [vmem:[#allocation3 + $0x10] sm:$0xff]  ;;  %p2854_p2 = scmp.ne.s32.totalorder %s1954_s7, %s2853_s8  ;;  %p2859_p4 = scmp.lt.s32.totalorder %s2853_s8, %s2853_s8 }
  0x2c   :  { %2066 = vmatpush1.bf16.msra.mxu0 %v2065_v9  ;;  %v380_v18 = vld [vmem:[#allocation3 + $0x38] sm:$0xff]  ;;  %v377_v20 = vld [vmem:[#allocation3 + $0x20] sm:$0xff]  ;;  %v379_v24 = vld [vmem:[#allocation3 + $0x30] sm:$0xff] }
  0x2d   :  { %2070 = vmatpush1.bf16.msra.mxu1 %v2069_v13  ;;  %v2981_v21 = vpack.c.bf16 %v380_v18, %v376_v16  ;;  %v2983_v22 = vpack.c.bf16 %v377_v20, %v373_v19  ;;  %2072 = vmatprep.subr.bf16.mxu0 %v2979_v17  ;;  %v2986_v25 = vpack.c.bf16 %v379_v24, %v375_v23  ;;  %v382_v26 = vld [vmem:[#allocation3 + $0x48] sm:$0xff]  ;;  %v384_v28 = vld [vmem:[#allocation3 + $0x58] sm:$0xff]  ;;  %v381_v31 = vld [vmem:[#allocation3 + $0x40] sm:$0xff]  ;;  %p2860_p5 = por %p2859_p4, %p2858_p3 }
  0x2e   :  { %v386_v27 = vld [vmem:[#allocation3 + $0x68] sm:$0xff]  ;;  %v388_v30 = vld [vmem:[#allocation3 + $0x78] sm:$0xff]  ;;  %v385_v32 = vld [vmem:[#allocation3 + $0x60] sm:$0xff] }
  0x2f   :  { %1970 = vmatmul.mubr.msk.f32.vlgmr.msra.gmra.mrb[0].mxu0 %vm90_vm0, %v52_v12  ;;  %2104 = vmatprep.subr.bf16.mxu1 %v2981_v21  ;;  %v2990_v29 = vpack.c.bf16 %v386_v27, %v382_v26  ;;  %v53_v33 = vld [vmem:[%s3455_s0 + $0x8] sm:$0xff]  ;;  %v2997_v34 = vpack.c.bf16 %v388_v30, %v384_v28  ;;  %v2999_v35 = vpack.c.bf16 %v385_v32, %v381_v31  ;;  %v383_v36 = vld [vmem:[#allocation3 + $0x50] sm:$0xff]  ;;  %v392_v41 = vld [vmem:[#allocation3 + $0x98] sm:$0xff]  ;;  %p2861_p6 = pnand %p2860_p5, %p2854_p2 }
  0x30   :  { %1978 = vmatmul.mubr.msk.f32.vlgmr.msra.gmra.mrb[0].mxu1 %vm90_vm0, %v52_v12  ;;  %2074 = vmatpush1.bf16.msra.mxu0 %v2983_v22  ;;  %v387_v37 = vld [vmem:[#allocation3 + $0x70] sm:$0xff]  ;;  %v390_v39 = vld [vmem:[#allocation3 + $0x88] sm:$0xff]  ;;  %v396_v43 = vld [vmem:[#allocation3 + $0xb8] sm:$0xff] }
  0x31   :  { %2106 = vmatpush1.bf16.msra.mxu1 %v2986_v25  ;;  %185 = vmatprep.mubr.f32.mxu0 %v2887_v0  ;;  %v3003_v38 = vpack.c.bf16 %v387_v37, %v383_v36  ;;  %v394_v40 = vld [vmem:[#allocation3 + $0xa8] sm:$0xff]  ;;  %v389_v44 = vld [vmem:[#allocation3 + $0x80] sm:$0xff]  ;;  %v54_v46 = vld [vmem:[%s3455_s0 + $0x10] sm:$0xff]  ;;  %v3014_v47 = vpack.c.bf16 %v396_v43, %v392_v41 }
  0x32   :  { %298 = vmatprep.mubr.f32.mxu1 %v2887_v0  ;;  %2076 = vmatprep.subr.bf16.mxu0 %v2990_v29  ;;  %v3007_v42 = vpack.c.bf16 %v394_v40, %v390_v39  ;;  %v393_v45 = vld [vmem:[#allocation3 + $0xa0] sm:$0xff]  ;;  %v391_v48 = vld [vmem:[#allocation3 + $0x90] sm:$0xff]  ;;  %v398_v51 = vld [vmem:[#allocation3 + $0xc8] sm:$0xff] }
  0x33   :  { %1971 = vmatmul.mubr.msk.f32.gmra.mrb[2].mxu0 %vm90_vm0, %v53_v33  ;;  %2108 = vmatprep.subr.bf16.mxu1 %v2997_v34  ;;  %v395_v49 = vld [vmem:[#allocation3 + $0xb0] sm:$0xff]  ;;  %v3018_v50 = vpack.c.bf16 %v393_v45, %v389_v44  ;;  %v402_v52 = vld [vmem:[#allocation3 + $0xe8] sm:$0xff]  ;;  %v400_v53 = vld [vmem:[#allocation3 + $0xd8] sm:$0xff] }
  0x34   :  { %1979 = vmatmul.mubr.msk.f32.gmra.mrb[2].mxu1 %vm90_vm0, %v53_v33  ;;  %2078 = vmatpush1.bf16.msra.mxu0 %v2999_v35  ;;  %v3022_v54 = vpack.c.bf16 %v395_v49, %v391_v48  ;;  %v404_v55 = vld [vmem:[#allocation3 + $0xf8] sm:$0xff]  ;;  %v397_v56 = vld [vmem:[#allocation3 + $0xc0] sm:$0xff]  ;;  %v3026_v58 = vpack.c.bf16 %v402_v52, %v398_v51  ;;  %v399_v59 = vld [vmem:[#allocation3 + $0xd0] sm:$0xff] }
  0x35   :  { %2110 = vmatpush1.bf16.msra.mxu1 %v3003_v38  ;;  %191 = vmatprep.mubr.f32.mxu0 %v2887_v0  ;;  %v401_v57 = vld [vmem:[#allocation3 + $0xe0] sm:$0xff]  ;;  %v403_v60 = vld [vmem:[#allocation3 + $0xf0] sm:$0xff]  ;;  %v3030_v61 = vpack.c.bf16 %v404_v55, %v400_v53  ;;  %v406_v62 = vld [vmem:[#allocation3 + $0x108] sm:$0xff] }
  0x36   :  { %304 = vmatprep.mubr.f32.mxu1 %v2887_v0  ;;  %2080 = vmatprep.subr.bf16.mxu0 %v3007_v42  ;;  %v410_v63 = vld [vmem:[#allocation3 + $0x128] sm:$0xff]  ;;  %v55_v1 = vld [vmem:[%s3455_s0 + $0x18] sm:$0xff]  ;;  %v3037_v2 = vpack.c.bf16 %v401_v57, %v397_v56  ;;  %v3041_v5 = vpack.c.bf16 %v403_v60, %v399_v59  ;;  %v405_v6 = vld [vmem:[#allocation3 + $0x100] sm:$0xff] }
  0x37   :  { %1972 = vmatmul.mubr.msk.f32.gmra.mrb[4].mxu0 %vm90_vm0, %v54_v46  ;;  %2112 = vmatprep.subr.bf16.mxu1 %v3014_v47  ;;  %v408_v3 = vld [vmem:[#allocation3 + $0x118] sm:$0xff]  ;;  %v409_v7 = vld [vmem:[#allocation3 + $0x120] sm:$0xff]  ;;  %v3045_v8 = vpack.c.bf16 %v410_v63, %v406_v62  ;;  %v407_v9 = vld [vmem:[#allocation3 + $0x110] sm:$0xff] }
  0x38   :  { %1980 = vmatmul.mubr.msk.f32.gmra.mrb[4].mxu1 %vm90_vm0, %v54_v46  ;;  %2082 = vmatpush1.bf16.msra.mxu0 %v3018_v50  ;;  %v412_v4 = vld [vmem:[#allocation3 + $0x138] sm:$0xff]  ;;  %v411_v10 = vld [vmem:[#allocation3 + $0x130] sm:$0xff]  ;;  %v414_v12 = vld [vmem:[#allocation3 + $0x148] sm:$0xff]  ;;  %v3056_v15 = vpack.c.bf16 %v409_v7, %v405_v6  ;;  %v70_v7 = vlaneseq }
  0x39   :  { %2114 = vmatpush1.bf16.msra.mxu1 %v3022_v54  ;;  %197 = vmatprep.mubr.f32.mxu0 %v2887_v0  ;;  %v3049_v11 = vpack.c.bf16 %v412_v4, %v408_v3  ;;  %v418_v13 = vld [vmem:[#allocation3 + $0x168] sm:$0xff]  ;;  %v56_v14 = vld [vmem:[%s3455_s0 + $0x20] sm:$0xff]  ;;  %v416_v16 = vld [vmem:[#allocation3 + $0x158] sm:$0xff]  ;;  %v3060_v19 = vpack.c.bf16 %v411_v10, %v407_v9 }
  0x3a   :  { %310 = vmatprep.mubr.f32.mxu1 %v2887_v0  ;;  %2084 = vmatprep.subr.bf16.mxu0 %v3026_v58  ;;  %v420_v18 = vld [vmem:[#allocation3 + $0x178] sm:$0xff]  ;;  %v413_v20 = vld [vmem:[#allocation3 + $0x140] sm:$0xff]  ;;  %v3064_v24 = vpack.c.bf16 %v418_v13, %v414_v12  ;;  %v415_v26 = vld [vmem:[#allocation3 + $0x150] sm:$0xff]  ;;  %v71_v9 = vshrl.u32 %v70_v7, 7 }
  0x3b   :  { %1973 = vmatmul.mubr.msk.f32.gmra.mrb[6].mxu0 %vm90_vm0, %v55_v1  ;;  %2116 = vmatprep.subr.bf16.mxu1 %v3030_v61  ;;  %v417_v23 = vld [vmem:[#allocation3 + $0x160] sm:$0xff]  ;;  %v419_v27 = vld [vmem:[#allocation3 + $0x170] sm:$0xff]  ;;  %v3068_v28 = vpack.c.bf16 %v420_v18, %v416_v16  ;;  %v422_v30 = vld [vmem:[#allocation3 + $0x188] sm:$0xff] }
  0x3c   :  { %1981 = vmatmul.mubr.msk.f32.gmra.mrb[6].mxu1 %vm90_vm0, %v55_v1  ;;  %2086 = vmatpush1.bf16.msra.mxu0 %v3037_v2  ;;  %v426_v31 = vld [vmem:[#allocation3 + $0x1a8] sm:$0xff]  ;;  %v3075_v33 = vpack.c.bf16 %v417_v23, %v413_v20  ;;  %v424_v36 = vld [vmem:[#allocation3 + $0x198] sm:$0xff]  ;;  %v3079_v39 = vpack.c.bf16 %v419_v27, %v415_v26  ;;  %v421_v40 = vld [vmem:[#allocation3 + $0x180] sm:$0xff]  ;;  %v72_v10 = vsub.s32 0, %v71_v9  ;;  %v76_v13 = vsub.s32 1, %v71_v9 }
  0x3d   :  { %2118 = vmatpush1.bf16.msra.mxu1 %v3041_v5  ;;  %203 = vmatprep.mubr.f32.mxu0 %v2887_v0  ;;  %v57_v32 = vld [vmem:[%s3455_s0 + $0x28] sm:$0xff]  ;;  %v428_v37 = vld [vmem:[#allocation3 + $0x1b8] sm:$0xff]  ;;  %v425_v41 = vld [vmem:[#allocation3 + $0x1a0] sm:$0xff]  ;;  %v3083_v43 = vpack.c.bf16 %v426_v31, %v422_v30  ;;  %v80_v20 = vsub.s32 2, %v71_v9 }
  0x3e   :  { %316 = vmatprep.mubr.f32.mxu1 %v2887_v0  ;;  %2088 = vmatprep.subr.bf16.mxu0 %v3045_v8  ;;  %v423_v44 = vld [vmem:[#allocation3 + $0x190] sm:$0xff]  ;;  %v3087_v46 = vpack.c.bf16 %v428_v37, %v424_v36  ;;  %v430_v48 = vld [vmem:[#allocation3 + $0x1c8] sm:$0xff]  ;;  %v3094_v52 = vpack.c.bf16 %v425_v41, %v421_v40  ;;  %v432_v53 = vld [vmem:[#allocation3 + $0x1d8] sm:$0xff]  ;;  %v84_v40 = vsub.s32 3, %v71_v9 }
  0x3f   :  { %1974 = vmatmul.mubr.msk.f32.gmra.mrb[8].mxu0 %vm90_vm0, %v56_v14  ;;  %2120 = vmatprep.subr.bf16.mxu1 %v3049_v11  ;;  %v427_v45 = vld [vmem:[#allocation3 + $0x1b0] sm:$0xff]  ;;  %v434_v49 = vld [vmem:[#allocation3 + $0x1e8] sm:$0xff]  ;;  %v436_v55 = vld [vmem:[#allocation3 + $0x1f8] sm:$0xff] }
  0x40   :  { %1982 = vmatmul.mubr.msk.f32.gmra.mrb[8].mxu1 %vm90_vm0, %v56_v14  ;;  %2090 = vmatpush1.bf16.msra.mxu0 %v3056_v15  ;;  %v58_v51 = vld [vmem:[%s3455_s0 + $0x30] sm:$0xff]  ;;  %v3098_v56 = vpack.c.bf16 %v427_v45, %v423_v44  ;;  %v429_v57 = vld [vmem:[#allocation3 + $0x1c0] sm:$0xff]  ;;  %v3102_v60 = vpack.c.bf16 %v434_v49, %v430_v48  ;;  %v3106_v1 = vpack.c.bf16 %v436_v55, %v432_v53  ;;  %v59_v3 = vld [vmem:[%s3455_s0 + $0x38] sm:$0xff] }
  0x41   :  { %2122 = vmatpush1.bf16.msra.mxu1 %v3060_v19  ;;  %209 = vmatprep.mubr.f32.mxu0 %v2887_v0  ;;  %v433_v59 = vld [vmem:[#allocation3 + $0x1e0] sm:$0xff]  ;;  %v431_v62 = vld [vmem:[#allocation3 + $0x1d0] sm:$0xff] }
  0x42   :  { %322 = vmatprep.mubr.f32.mxu1 %v2887_v0  ;;  %2092 = vmatprep.subr.bf16.mxu0 %v3064_v24  ;;  %v435_v63 = vld [vmem:[#allocation3 + $0x1f0] sm:$0xff]  ;;  %v3113_v4 = vpack.c.bf16 %v433_v59, %v429_v57  ;;  %v68_v12 = vld [vmem:[%s3458_s3] sm:$0xf] }
  0x43   :  { %1975 = vmatmul.mubr.msk.f32.gmra.mrb[10].mxu0 %vm90_vm0, %v57_v32  ;;  %2124 = vmatprep.subr.bf16.mxu1 %v3068_v28  ;;  %v3117_v6 = vpack.c.bf16 %v435_v63, %v431_v62  ;;  %v3169_v14 = vrot.slane %v68_v12, %v72_v10  ;;  %v3171_v16 = vrot.slane %v68_v12, %v76_v13 }
  0x44   :  { %1983 = vmatmul.mubr.msk.f32.gmra.mrb[10].mxu1 %vm90_vm0, %v57_v32  ;;  %2094 = vmatpush1.bf16.msra.mxu0 %v3075_v33  ;;  %v3175_v36 = vrot.slane %v68_v12, %v80_v20  ;;  %v3178_v44 = vrot.slane %v68_v12, %v84_v40 }
  0x45   :  { %2126 = vmatpush1.bf16.msra.mxu1 %v3079_v39  ;;  %215 = vmatprep.mubr.f32.mxu0 %v2887_v0 }
  0x46   :  { %328 = vmatprep.mubr.f32.mxu1 %v2887_v0  ;;  %2096 = vmatprep.subr.bf16.mxu0 %v3083_v43 }
  0x47   :  { %1976 = vmatmul.mubr.msk.f32.gmra.mrb[12].mxu0 %vm90_vm0, %v58_v51  ;;  %2128 = vmatprep.subr.bf16.mxu1 %v3087_v46 }
  0x48   :  { %1984 = vmatmul.mubr.msk.f32.gmra.mrb[12].mxu1 %vm90_vm0, %v58_v51  ;;  %2098 = vmatpush1.bf16.msra.mxu0 %v3094_v52 }
  0x49   :  { %2130 = vmatpush1.bf16.msra.mxu1 %v3098_v56  ;;  %221 = vmatprep.mubr.f32.mxu0 %v2887_v0 }
  0x4a   :  { %334 = vmatprep.mubr.f32.mxu1 %v2887_v0  ;;  %2100 = vmatprep.subr.bf16.mxu0 %v3102_v60 }
  0x4b   :  { %1977 = vmatmul.mubr.msk.f32.gmra.mrb[14].mxu0 %vm90_vm0, %v59_v3  ;;  %2132 = vmatprep.subr.bf16.mxu1 %v3106_v1 }
  0x4c   :  { %1985 = vmatmul.mubr.msk.f32.gmra.mrb[14].mxu1 %vm90_vm0, %v59_v3  ;;  %2102 = vmatpush1.bf16.msra.mxu0 %v3113_v4 }
  0x4d   :  { %2134 = vmatpush1.bf16.msra.mxu1 %v3117_v6  ;;  %508 = vmatprep.mubr.f32.mxu0 %v2887_v0 }
  0x4e   :  { %579 = vmatprep.mubr.f32.mxu1 %v2887_v0  ;;  %2136 = vmatprep.subr.bf16.mxu0 %v2979_v17 }
  0x4f   :  { %509 = vmatmul.mubr.f32.vlgmr.msra.gmra.mrb[0].mxu0 %v2887_v0  ;;  %2168 = vmatprep.subr.bf16.mxu1 %v2981_v21 }
  0x50   :  { %580 = vmatmul.mubr.f32.vlgmr.msra.gmra.mrb[0].mxu1 %v2887_v0  ;;  %2138 = vmatpush1.bf16.msra.mxu0 %v2983_v22 }
  0x51   :  { %2170 = vmatpush1.bf16.msra.mxu1 %v2986_v25  ;;  %2140 = vmatprep.subr.bf16.mxu0 %v2990_v29 }
  0x52   :  { %2172 = vmatprep.subr.bf16.mxu1 %v2997_v34  ;;  %685 = vmatprep.mubr.f32.mxu0 %v2887_v0 }
  0x53   :  { %756 = vmatprep.mubr.f32.mxu1 %v2887_v0 }
  0x54   :  { %2142 = vmatpush1.bf16.msra.mxu0 %v2999_v35 }
  0x55   :  { %2174 = vmatpush1.bf16.msra.mxu1 %v3003_v38  ;;  %2144 = vmatprep.subr.bf16.mxu0 %v3007_v42 }
  0x56   :  { %2176 = vmatprep.subr.bf16.mxu1 %v3014_v47 }
  0x58   :  { %2146 = vmatpush1.bf16.msra.mxu0 %v3018_v50 }
  0x59   :  { %2178 = vmatpush1.bf16.msra.mxu1 %v3022_v54  ;;  %2148 = vmatprep.subr.bf16.mxu0 %v3026_v58 }
  0x5a   :  { %2180 = vmatprep.subr.bf16.mxu1 %v3030_v61 }
  0x5c   :  { %2150 = vmatpush1.bf16.msra.mxu0 %v3037_v2 }
  0x5d   :  { %2182 = vmatpush1.bf16.msra.mxu1 %v3041_v5  ;;  %2152 = vmatprep.subr.bf16.mxu0 %v3045_v8 }
  0x5e   :  { %2184 = vmatprep.subr.bf16.mxu1 %v3049_v11 }
  0x60   :  { %2154 = vmatpush1.bf16.msra.mxu0 %v3056_v15 }
  0x61   :  { %2186 = vmatpush1.bf16.msra.mxu1 %v3060_v19  ;;  %2156 = vmatprep.subr.bf16.mxu0 %v3064_v24 }
  0x62   :  { %2188 = vmatprep.subr.bf16.mxu1 %v3068_v28 }
  0x64   :  { %2158 = vmatpush1.bf16.msra.mxu0 %v3075_v33 }
  0x65   :  { %2190 = vmatpush1.bf16.msra.mxu1 %v3079_v39  ;;  %2160 = vmatprep.subr.bf16.mxu0 %v3083_v43 }
  0x66   :  { %2192 = vmatprep.subr.bf16.mxu1 %v3087_v46 }
  0x68   :  { %2162 = vmatpush1.bf16.msra.mxu0 %v3094_v52 }
  0x69   :  { %2194 = vmatpush1.bf16.msra.mxu1 %v3098_v56  ;;  %2164 = vmatprep.subr.bf16.mxu0 %v3102_v60 }
  0x6a   :  { %2196 = vmatprep.subr.bf16.mxu1 %v3106_v1 }
  0x6c   :  { %2166 = vmatpush1.bf16.msra.mxu0 %v3113_v4 }
  0x6d   :  { %2198 = vmatpush1.bf16.msra.mxu1 %v3117_v6  ;;  %2200 = vmatprep.subr.bf16.mxu0 %v2979_v17 }
  0x6e   :  { %2232 = vmatprep.subr.bf16.mxu1 %v2981_v21 }
 0x122   :  { %v510_v18 = vpop.f32.mrb[0].mxu0 }
 0x123   :  { %v2607_v23 = vadd.f32 %v510_v18, %v3169_v14  ;;  %v581_v26 = vpop.f32.mrb[0].mxu1  ;;  %v512_v27 = vpop.f32.mrb[1].mxu0 }
 0x124   :  { %v2608_v30 = vadd.f32 %v512_v27, %v3171_v16  ;;  %v583_v31 = vpop.f32.mrb[1].mxu1  ;;  %v2623_v41 = vadd.f32 %v581_v26, %v3175_v36 }
 0x125   :  { %v1986_v32 = vmul.f32 -1.442695, %v2607_v23  ;;  %v2624_v48 = vadd.f32 %v583_v31, %v3178_v44 }
 0x126   :  { %v1987_v37 = vmul.f32 -1.442695, %v2608_v30  ;;  %v1988_v45 = vmul.f32 -1.442695, %v2623_v41 }
 0x127   :  { %2681 = vpow2.f32 %v1986_v32 }
 0x128   :  { %2683 = vpow2.f32 %v1987_v37 }
 0x129   :  { %2685 = vpow2.f32 %v1988_v45 }
 0x12a   :  { %2687 = vtanh.f32 %v2624_v48 }
 0x131   :  { %v2682_v49 = vpop.eup %2681 }
 0x132   :  { %v599_v51 = vadd.f32 1.0, %v2682_v49  ;;  %v2684_v53 = vpop.eup %2683 }
 0x133   :  { %v600_v55 = vadd.f32 1.0, %v2684_v53  ;;  %v2686_v57 = vpop.eup %2685 }
 0x134   :  { %2689 = vrcp.f32 %v599_v51  ;;  %v2688_v59 = vpop.eup %2687  ;;  %v601_v7 = vadd.f32 1.0, %v2686_v57 }
 0x135   :  { %2691 = vrcp.f32 %v600_v55 }
 0x136   :  { %2693 = vrcp.f32 %v601_v7 }
 0x13e   :  { %v2690_v62 = vpop.eup %2689 }
 0x13f   :  { %v610_v63 = vmul.f32 %v2690_v62, %v2688_v59  ;;  %v2692_v3 = vpop.eup %2691 }
 0x140   :  { %v609_v9 = vmul.f32 0.0, %v2692_v3  ;;  %v2694_v12 = vpop.eup %2693 }
 0x142   :  { %v3181_v10 = vadd.f32 %v610_v63, %v609_v9 }
 0x144   :  { %2695 = vtanh.f32 %v3181_v10 }
 0x14e   :  { %v2696_v13 = vpop.eup %2695 }
 0x14f   :  { %v613_v18 = vmul.f32 %v2696_v13, %v2694_v12 }
 0x151   :  { %686 = vmatmul.mubr.f32.vlgmr.msra.gmra.mrb[2].mxu0 %v613_v18  ;;  %757 = vmatmul.mubr.f32.vlgmr.msra.gmra.mrb[2].mxu1 %v613_v18 }
 0x152   :  { %2202 = vmatpush1.bf16.msra.mxu0 %v2983_v22  ;;  %2234 = vmatpush1.bf16.msra.mxu1 %v2986_v25 }
 0x153   :  { %2204 = vmatprep.subr.bf16.mxu0 %v2990_v29  ;;  %2236 = vmatprep.subr.bf16.mxu1 %v2997_v34 }
 0x154   :  { %862 = vmatprep.mubr.f32.mxu0 %v2887_v0  ;;  %933 = vmatprep.mubr.f32.mxu1 %v2887_v0 }
 0x156   :  { %2206 = vmatpush1.bf16.msra.mxu0 %v2999_v35  ;;  %2238 = vmatpush1.bf16.msra.mxu1 %v3003_v38 }
 0x157   :  { %2208 = vmatprep.subr.bf16.mxu0 %v3007_v42  ;;  %2240 = vmatprep.subr.bf16.mxu1 %v3014_v47 }
 0x15a   :  { %2210 = vmatpush1.bf16.msra.mxu0 %v3018_v50  ;;  %2242 = vmatpush1.bf16.msra.mxu1 %v3022_v54 }
 0x15b   :  { %2212 = vmatprep.subr.bf16.mxu0 %v3026_v58  ;;  %2244 = vmatprep.subr.bf16.mxu1 %v3030_v61 }
 0x15e   :  { %2214 = vmatpush1.bf16.msra.mxu0 %v3037_v2  ;;  %2246 = vmatpush1.bf16.msra.mxu1 %v3041_v5 }
 0x15f   :  { %2216 = vmatprep.subr.bf16.mxu0 %v3045_v8  ;;  %2248 = vmatprep.subr.bf16.mxu1 %v3049_v11 }
 0x162   :  { %2218 = vmatpush1.bf16.msra.mxu0 %v3056_v15  ;;  %2250 = vmatpush1.bf16.msra.mxu1 %v3060_v19 }
 0x163   :  { %2220 = vmatprep.subr.bf16.mxu0 %v3064_v24  ;;  %2252 = vmatprep.subr.bf16.mxu1 %v3068_v28 }
 0x166   :  { %2222 = vmatpush1.bf16.msra.mxu0 %v3075_v33  ;;  %2254 = vmatpush1.bf16.msra.mxu1 %v3079_v39 }
 0x167   :  { %2224 = vmatprep.subr.bf16.mxu0 %v3083_v43  ;;  %2256 = vmatprep.subr.bf16.mxu1 %v3087_v46 }
 0x16a   :  { %2226 = vmatpush1.bf16.msra.mxu0 %v3094_v52  ;;  %2258 = vmatpush1.bf16.msra.mxu1 %v3098_v56 }
 0x16b   :  { %2228 = vmatprep.subr.bf16.mxu0 %v3102_v60  ;;  %2260 = vmatprep.subr.bf16.mxu1 %v3106_v1 }
 0x16e   :  { %2230 = vmatpush1.bf16.msra.mxu0 %v3113_v4  ;;  %2262 = vmatpush1.bf16.msra.mxu1 %v3117_v6 }
 0x16f   :  { %2264 = vmatprep.subr.bf16.mxu0 %v2979_v17  ;;  %2296 = vmatprep.subr.bf16.mxu1 %v2981_v21 }
 0x224   :  { %v687_v20 = vpop.f32.mrb[2].mxu0  ;;  %v758_v23 = vpop.f32.mrb[2].mxu1 }
 0x225   :  { %v2609_v26 = vadd.f32 %v687_v20, %v3169_v14  ;;  %v689_v27 = vpop.f32.mrb[3].mxu0  ;;  %v760_v30 = vpop.f32.mrb[3].mxu1  ;;  %v2625_v40 = vadd.f32 %v758_v23, %v3175_v36 }
 0x226   :  { %v2610_v31 = vadd.f32 %v689_v27, %v3171_v16  ;;  %v2626_v41 = vadd.f32 %v760_v30, %v3178_v44 }
 0x227   :  { %v1989_v32 = vmul.f32 -1.442695, %v2609_v26  ;;  %v1991_v45 = vmul.f32 -1.442695, %v2625_v40 }
 0x228   :  { %v1990_v37 = vmul.f32 -1.442695, %v2610_v31 }
 0x229   :  { %2697 = vpow2.f32 %v1989_v32 }
 0x22a   :  { %2699 = vpow2.f32 %v1990_v37 }
 0x22b   :  { %2701 = vtanh.f32 %v2626_v41 }
 0x22c   :  { %2703 = vpow2.f32 %v1991_v45 }
 0x233   :  { %v2698_v48 = vpop.eup %2697 }
 0x234   :  { %v776_v49 = vadd.f32 1.0, %v2698_v48  ;;  %v2700_v51 = vpop.eup %2699 }
 0x235   :  { %v777_v53 = vadd.f32 1.0, %v2700_v51  ;;  %v2702_v55 = vpop.eup %2701 }
 0x236   :  { %2705 = vrcp.f32 %v776_v49  ;;  %v2704_v57 = vpop.eup %2703 }
 0x237   :  { %2707 = vrcp.f32 %v777_v53  ;;  %v778_v3 = vadd.f32 1.0, %v2704_v57 }
 0x239   :  { %2709 = vrcp.f32 %v778_v3 }
 0x240   :  { %v2706_v59 = vpop.eup %2705 }
 0x241   :  { %v787_v62 = vmul.f32 %v2706_v59, %v2702_v55  ;;  %v2708_v63 = vpop.eup %2707 }
 0x242   :  { %v786_v7 = vmul.f32 %v2708_v63, %v3181_v10 }
 0x243   :  { %v2710_v12 = vpop.eup %2709 }
 0x244   :  { %v3223_v9 = vadd.f32 %v787_v62, %v786_v7 }
 0x246   :  { %2711 = vtanh.f32 %v3223_v9 }
 0x250   :  { %v2712_v13 = vpop.eup %2711 }
 0x251   :  { %v790_v18 = vmul.f32 %v2712_v13, %v2710_v12 }
 0x253   :  { %863 = vmatmul.mubr.f32.vlgmr.msra.gmra.mrb[4].mxu0 %v790_v18  ;;  %934 = vmatmul.mubr.f32.vlgmr.msra.gmra.mrb[4].mxu1 %v790_v18 }
 0x254   :  { %2266 = vmatpush1.bf16.msra.mxu0 %v2983_v22  ;;  %2298 = vmatpush1.bf16.msra.mxu1 %v2986_v25 }
 0x255   :  { %2268 = vmatprep.subr.bf16.mxu0 %v2990_v29  ;;  %2300 = vmatprep.subr.bf16.mxu1 %v2997_v34 }
 0x256   :  { %1039 = vmatprep.mubr.f32.mxu0 %v2887_v0  ;;  %1110 = vmatprep.mubr.f32.mxu1 %v2887_v0 }
 0x258   :  { %2270 = vmatpush1.bf16.msra.mxu0 %v2999_v35  ;;  %2302 = vmatpush1.bf16.msra.mxu1 %v3003_v38 }
 0x259   :  { %2272 = vmatprep.subr.bf16.mxu0 %v3007_v42  ;;  %2304 = vmatprep.subr.bf16.mxu1 %v3014_v47 }
 0x25c   :  { %2274 = vmatpush1.bf16.msra.mxu0 %v3018_v50  ;;  %2306 = vmatpush1.bf16.msra.mxu1 %v3022_v54 }
 0x25d   :  { %2276 = vmatprep.subr.bf16.mxu0 %v3026_v58  ;;  %2308 = vmatprep.subr.bf16.mxu1 %v3030_v61 }
 0x260   :  { %2278 = vmatpush1.bf16.msra.mxu0 %v3037_v2  ;;  %2310 = vmatpush1.bf16.msra.mxu1 %v3041_v5 }
 0x261   :  { %2280 = vmatprep.subr.bf16.mxu0 %v3045_v8  ;;  %2312 = vmatprep.subr.bf16.mxu1 %v3049_v11 }
 0x264   :  { %2282 = vmatpush1.bf16.msra.mxu0 %v3056_v15  ;;  %2314 = vmatpush1.bf16.msra.mxu1 %v3060_v19 }
 0x265   :  { %2284 = vmatprep.subr.bf16.mxu0 %v3064_v24  ;;  %2316 = vmatprep.subr.bf16.mxu1 %v3068_v28 }
 0x268   :  { %2286 = vmatpush1.bf16.msra.mxu0 %v3075_v33  ;;  %2318 = vmatpush1.bf16.msra.mxu1 %v3079_v39 }
 0x269   :  { %2288 = vmatprep.subr.bf16.mxu0 %v3083_v43  ;;  %2320 = vmatprep.subr.bf16.mxu1 %v3087_v46 }
 0x26c   :  { %2290 = vmatpush1.bf16.msra.mxu0 %v3094_v52  ;;  %2322 = vmatpush1.bf16.msra.mxu1 %v3098_v56 }
 0x26d   :  { %2292 = vmatprep.subr.bf16.mxu0 %v3102_v60  ;;  %2324 = vmatprep.subr.bf16.mxu1 %v3106_v1 }
 0x270   :  { %2294 = vmatpush1.bf16.msra.mxu0 %v3113_v4  ;;  %2326 = vmatpush1.bf16.msra.mxu1 %v3117_v6 }
 0x271   :  { %2328 = vmatprep.subr.bf16.mxu0 %v2979_v17  ;;  %2360 = vmatprep.subr.bf16.mxu1 %v2981_v21 }
 0x326   :  { %v864_v10 = vpop.f32.mrb[4].mxu0  ;;  %v935_v20 = vpop.f32.mrb[4].mxu1 }
 0x327   :  { %v2611_v23 = vadd.f32 %v864_v10, %v3169_v14  ;;  %v866_v26 = vpop.f32.mrb[5].mxu0  ;;  %v937_v27 = vpop.f32.mrb[5].mxu1  ;;  %v2627_v37 = vadd.f32 %v935_v20, %v3175_v36 }
 0x328   :  { %v2612_v30 = vadd.f32 %v866_v26, %v3171_v16  ;;  %v2628_v40 = vadd.f32 %v937_v27, %v3178_v44 }
 0x329   :  { %v1992_v31 = vmul.f32 -1.442695, %v2611_v23  ;;  %v1994_v41 = vmul.f32 -1.442695, %v2627_v37 }
 0x32a   :  { %v1993_v32 = vmul.f32 -1.442695, %v2612_v30 }
 0x32b   :  { %2713 = vpow2.f32 %v1992_v31 }
 0x32c   :  { %2715 = vpow2.f32 %v1993_v32 }
 0x32d   :  { %2717 = vtanh.f32 %v2628_v40 }
 0x32e   :  { %2719 = vpow2.f32 %v1994_v41 }
 0x335   :  { %v2714_v45 = vpop.eup %2713 }
 0x336   :  { %v953_v48 = vadd.f32 1.0, %v2714_v45  ;;  %v2716_v49 = vpop.eup %2715 }
 0x337   :  { %v954_v51 = vadd.f32 1.0, %v2716_v49  ;;  %v2718_v53 = vpop.eup %2717 }
 0x338   :  { %2721 = vrcp.f32 %v953_v48  ;;  %v2720_v55 = vpop.eup %2719 }
 0x339   :  { %2723 = vrcp.f32 %v954_v51  ;;  %v955_v63 = vadd.f32 1.0, %v2720_v55 }
 0x33b   :  { %2725 = vrcp.f32 %v955_v63 }
 0x342   :  { %v2722_v57 = vpop.eup %2721 }
 0x343   :  { %v964_v59 = vmul.f32 %v2722_v57, %v2718_v53  ;;  %v2724_v62 = vpop.eup %2723 }
 0x344   :  { %v963_v3 = vmul.f32 %v2724_v62, %v3223_v9 }
 0x345   :  { %v2726_v12 = vpop.eup %2725 }
 0x346   :  { %v3265_v7 = vadd.f32 %v964_v59, %v963_v3 }
 0x348   :  { %2727 = vtanh.f32 %v3265_v7 }
 0x352   :  { %v2728_v13 = vpop.eup %2727 }
 0x353   :  { %v967_v18 = vmul.f32 %v2728_v13, %v2726_v12 }
 0x355   :  { %1040 = vmatmul.mubr.f32.vlgmr.msra.gmra.mrb[6].mxu0 %v967_v18  ;;  %1111 = vmatmul.mubr.f32.vlgmr.msra.gmra.mrb[6].mxu1 %v967_v18 }
 0x356   :  { %2330 = vmatpush1.bf16.msra.mxu0 %v2983_v22  ;;  %2362 = vmatpush1.bf16.msra.mxu1 %v2986_v25 }
 0x357   :  { %2332 = vmatprep.subr.bf16.mxu0 %v2990_v29  ;;  %2364 = vmatprep.subr.bf16.mxu1 %v2997_v34 }
 0x358   :  { %1216 = vmatprep.mubr.f32.mxu0 %v2887_v0  ;;  %1287 = vmatprep.mubr.f32.mxu1 %v2887_v0 }
 0x35a   :  { %2334 = vmatpush1.bf16.msra.mxu0 %v2999_v35  ;;  %2366 = vmatpush1.bf16.msra.mxu1 %v3003_v38 }
 0x35b   :  { %2336 = vmatprep.subr.bf16.mxu0 %v3007_v42  ;;  %2368 = vmatprep.subr.bf16.mxu1 %v3014_v47 }
 0x35e   :  { %2338 = vmatpush1.bf16.msra.mxu0 %v3018_v50  ;;  %2370 = vmatpush1.bf16.msra.mxu1 %v3022_v54 }
 0x35f   :  { %2340 = vmatprep.subr.bf16.mxu0 %v3026_v58  ;;  %2372 = vmatprep.subr.bf16.mxu1 %v3030_v61 }
 0x362   :  { %2342 = vmatpush1.bf16.msra.mxu0 %v3037_v2  ;;  %2374 = vmatpush1.bf16.msra.mxu1 %v3041_v5 }
 0x363   :  { %2344 = vmatprep.subr.bf16.mxu0 %v3045_v8  ;;  %2376 = vmatprep.subr.bf16.mxu1 %v3049_v11 }
 0x366   :  { %2346 = vmatpush1.bf16.msra.mxu0 %v3056_v15  ;;  %2378 = vmatpush1.bf16.msra.mxu1 %v3060_v19 }
 0x367   :  { %2348 = vmatprep.subr.bf16.mxu0 %v3064_v24  ;;  %2380 = vmatprep.subr.bf16.mxu1 %v3068_v28 }
 0x36a   :  { %2350 = vmatpush1.bf16.msra.mxu0 %v3075_v33  ;;  %2382 = vmatpush1.bf16.msra.mxu1 %v3079_v39 }
 0x36b   :  { %2352 = vmatprep.subr.bf16.mxu0 %v3083_v43  ;;  %2384 = vmatprep.subr.bf16.mxu1 %v3087_v46 }
 0x36e   :  { %2354 = vmatpush1.bf16.msra.mxu0 %v3094_v52  ;;  %2386 = vmatpush1.bf16.msra.mxu1 %v3098_v56 }
 0x36f   :  { %2356 = vmatprep.subr.bf16.mxu0 %v3102_v60  ;;  %2388 = vmatprep.subr.bf16.mxu1 %v3106_v1 }
 0x372   :  { %2358 = vmatpush1.bf16.msra.mxu0 %v3113_v4  ;;  %2390 = vmatpush1.bf16.msra.mxu1 %v3117_v6 }
 0x373   :  { %2392 = vmatprep.subr.bf16.mxu0 %v2979_v17  ;;  %2424 = vmatprep.subr.bf16.mxu1 %v2981_v21 }
 0x428   :  { %v1041_v9 = vpop.f32.mrb[6].mxu0  ;;  %v1112_v10 = vpop.f32.mrb[6].mxu1 }
 0x429   :  { %v2613_v20 = vadd.f32 %v1041_v9, %v3169_v14  ;;  %v1043_v23 = vpop.f32.mrb[7].mxu0  ;;  %v1114_v26 = vpop.f32.mrb[7].mxu1  ;;  %v2629_v32 = vadd.f32 %v1112_v10, %v3175_v36 }
 0x42a   :  { %v2614_v27 = vadd.f32 %v1043_v23, %v3171_v16  ;;  %v2630_v37 = vadd.f32 %v1114_v26, %v3178_v44 }
 0x42b   :  { %v1995_v30 = vmul.f32 -1.442695, %v2613_v20  ;;  %v1997_v40 = vmul.f32 -1.442695, %v2629_v32 }
 0x42c   :  { %v1996_v31 = vmul.f32 -1.442695, %v2614_v27 }
 0x42d   :  { %2729 = vpow2.f32 %v1995_v30 }
 0x42e   :  { %2731 = vpow2.f32 %v1996_v31 }
 0x42f   :  { %2733 = vtanh.f32 %v2630_v37 }
 0x430   :  { %2735 = vpow2.f32 %v1997_v40 }
 0x437   :  { %v2730_v41 = vpop.eup %2729 }
 0x438   :  { %v1130_v45 = vadd.f32 1.0, %v2730_v41  ;;  %v2732_v48 = vpop.eup %2731 }
 0x439   :  { %v1131_v49 = vadd.f32 1.0, %v2732_v48  ;;  %v2734_v51 = vpop.eup %2733 }
 0x43a   :  { %2737 = vrcp.f32 %v1130_v45  ;;  %v2736_v53 = vpop.eup %2735 }
 0x43b   :  { %2739 = vrcp.f32 %v1131_v49  ;;  %v1132_v62 = vadd.f32 1.0, %v2736_v53 }
 0x43d   :  { %2741 = vrcp.f32 %v1132_v62 }
 0x444   :  { %v2738_v55 = vpop.eup %2737 }
 0x445   :  { %v1141_v57 = vmul.f32 %v2738_v55, %v2734_v51  ;;  %v2740_v59 = vpop.eup %2739 }
 0x446   :  { %v1140_v63 = vmul.f32 %v2740_v59, %v3265_v7 }
 0x447   :  { %v2742_v12 = vpop.eup %2741 }
 0x448   :  { %v3307_v3 = vadd.f32 %v1141_v57, %v1140_v63 }
 0x44a   :  { %2743 = vtanh.f32 %v3307_v3 }
 0x454   :  { %v2744_v13 = vpop.eup %2743 }
 0x455   :  { %v1144_v18 = vmul.f32 %v2744_v13, %v2742_v12 }
 0x457   :  { %1217 = vmatmul.mubr.f32.vlgmr.msra.gmra.mrb[8].mxu0 %v1144_v18  ;;  %1288 = vmatmul.mubr.f32.vlgmr.msra.gmra.mrb[8].mxu1 %v1144_v18 }
 0x458   :  { %2394 = vmatpush1.bf16.msra.mxu0 %v2983_v22  ;;  %2426 = vmatpush1.bf16.msra.mxu1 %v2986_v25 }
 0x459   :  { %2396 = vmatprep.subr.bf16.mxu0 %v2990_v29  ;;  %2428 = vmatprep.subr.bf16.mxu1 %v2997_v34 }
 0x45a   :  { %1393 = vmatprep.mubr.f32.mxu0 %v2887_v0  ;;  %1464 = vmatprep.mubr.f32.mxu1 %v2887_v0 }
 0x45c   :  { %2398 = vmatpush1.bf16.msra.mxu0 %v2999_v35  ;;  %2430 = vmatpush1.bf16.msra.mxu1 %v3003_v38 }
 0x45d   :  { %2400 = vmatprep.subr.bf16.mxu0 %v3007_v42  ;;  %2432 = vmatprep.subr.bf16.mxu1 %v3014_v47 }
 0x460   :  { %2402 = vmatpush1.bf16.msra.mxu0 %v3018_v50  ;;  %2434 = vmatpush1.bf16.msra.mxu1 %v3022_v54 }
 0x461   :  { %2404 = vmatprep.subr.bf16.mxu0 %v3026_v58  ;;  %2436 = vmatprep.subr.bf16.mxu1 %v3030_v61 }
 0x464   :  { %2406 = vmatpush1.bf16.msra.mxu0 %v3037_v2  ;;  %2438 = vmatpush1.bf16.msra.mxu1 %v3041_v5 }
 0x465   :  { %2408 = vmatprep.subr.bf16.mxu0 %v3045_v8  ;;  %2440 = vmatprep.subr.bf16.mxu1 %v3049_v11 }
 0x468   :  { %2410 = vmatpush1.bf16.msra.mxu0 %v3056_v15  ;;  %2442 = vmatpush1.bf16.msra.mxu1 %v3060_v19 }
 0x469   :  { %2412 = vmatprep.subr.bf16.mxu0 %v3064_v24  ;;  %2444 = vmatprep.subr.bf16.mxu1 %v3068_v28 }
 0x46c   :  { %2414 = vmatpush1.bf16.msra.mxu0 %v3075_v33  ;;  %2446 = vmatpush1.bf16.msra.mxu1 %v3079_v39 }
 0x46d   :  { %2416 = vmatprep.subr.bf16.mxu0 %v3083_v43  ;;  %2448 = vmatprep.subr.bf16.mxu1 %v3087_v46 }
 0x470   :  { %2418 = vmatpush1.bf16.msra.mxu0 %v3094_v52  ;;  %2450 = vmatpush1.bf16.msra.mxu1 %v3098_v56 }
 0x471   :  { %2420 = vmatprep.subr.bf16.mxu0 %v3102_v60  ;;  %2452 = vmatprep.subr.bf16.mxu1 %v3106_v1 }
 0x474   :  { %2422 = vmatpush1.bf16.msra.mxu0 %v3113_v4  ;;  %2454 = vmatpush1.bf16.msra.mxu1 %v3117_v6 }
 0x475   :  { %2456 = vmatprep.subr.bf16.mxu0 %v2979_v17  ;;  %2488 = vmatprep.subr.bf16.mxu1 %v2981_v21 }
 0x52a   :  { %v1218_v7 = vpop.f32.mrb[8].mxu0  ;;  %v1289_v9 = vpop.f32.mrb[8].mxu1 }
 0x52b   :  { %v2615_v10 = vadd.f32 %v1218_v7, %v3169_v14  ;;  %v1220_v20 = vpop.f32.mrb[9].mxu0  ;;  %v1291_v23 = vpop.f32.mrb[9].mxu1  ;;  %v2631_v31 = vadd.f32 %v1289_v9, %v3175_v36 }
 0x52c   :  { %v2616_v26 = vadd.f32 %v1220_v20, %v3171_v16  ;;  %v2632_v32 = vadd.f32 %v1291_v23, %v3178_v44 }
 0x52d   :  { %v1998_v27 = vmul.f32 -1.442695, %v2615_v10  ;;  %v2000_v37 = vmul.f32 -1.442695, %v2631_v31 }
 0x52e   :  { %v1999_v30 = vmul.f32 -1.442695, %v2616_v26 }
 0x52f   :  { %2745 = vpow2.f32 %v1998_v27 }
 0x530   :  { %2747 = vpow2.f32 %v1999_v30 }
 0x531   :  { %2749 = vtanh.f32 %v2632_v32 }
 0x532   :  { %2751 = vpow2.f32 %v2000_v37 }
 0x539   :  { %v2746_v40 = vpop.eup %2745 }
 0x53a   :  { %v1307_v41 = vadd.f32 1.0, %v2746_v40  ;;  %v2748_v45 = vpop.eup %2747 }
 0x53b   :  { %v1308_v48 = vadd.f32 1.0, %v2748_v45  ;;  %v2750_v49 = vpop.eup %2749 }
 0x53c   :  { %2753 = vrcp.f32 %v1307_v41  ;;  %v2752_v51 = vpop.eup %2751 }
 0x53d   :  { %2755 = vrcp.f32 %v1308_v48  ;;  %v1309_v59 = vadd.f32 1.0, %v2752_v51 }
 0x53f   :  { %2757 = vrcp.f32 %v1309_v59 }
 0x546   :  { %v2754_v53 = vpop.eup %2753 }
 0x547   :  { %v1318_v55 = vmul.f32 %v2754_v53, %v2750_v49  ;;  %v2756_v57 = vpop.eup %2755 }
 0x548   :  { %v1317_v62 = vmul.f32 %v2756_v57, %v3307_v3 }
 0x549   :  { %v2758_v12 = vpop.eup %2757 }
 0x54a   :  { %v3349_v63 = vadd.f32 %v1318_v55, %v1317_v62 }
 0x54c   :  { %2759 = vtanh.f32 %v3349_v63 }
 0x556   :  { %v2760_v13 = vpop.eup %2759 }
 0x557   :  { %v1321_v18 = vmul.f32 %v2760_v13, %v2758_v12  ;;  %v1856_v13 = vld [vmem:[#allocation6 + $0x18] sm:$0xff] }
 0x559   :  { %1394 = vmatmul.mubr.f32.vlgmr.msra.gmra.mrb[10].mxu0 %v1321_v18  ;;  %1465 = vmatmul.mubr.f32.vlgmr.msra.gmra.mrb[10].mxu1 %v1321_v18 }
 0x55a   :  { %2458 = vmatpush1.bf16.msra.mxu0 %v2983_v22  ;;  %2490 = vmatpush1.bf16.msra.mxu1 %v2986_v25 }
 0x55b   :  { %2460 = vmatprep.subr.bf16.mxu0 %v2990_v29  ;;  %2492 = vmatprep.subr.bf16.mxu1 %v2997_v34 }
 0x55c   :  { %1570 = vmatprep.mubr.f32.mxu0 %v2887_v0  ;;  %1641 = vmatprep.mubr.f32.mxu1 %v2887_v0 }
 0x55e   :  { %2462 = vmatpush1.bf16.msra.mxu0 %v2999_v35  ;;  %2494 = vmatpush1.bf16.msra.mxu1 %v3003_v38 }
 0x55f   :  { %2464 = vmatprep.subr.bf16.mxu0 %v3007_v42  ;;  %2496 = vmatprep.subr.bf16.mxu1 %v3014_v47 }
 0x562   :  { %2466 = vmatpush1.bf16.msra.mxu0 %v3018_v50  ;;  %2498 = vmatpush1.bf16.msra.mxu1 %v3022_v54 }
 0x563   :  { %2468 = vmatprep.subr.bf16.mxu0 %v3026_v58  ;;  %2500 = vmatprep.subr.bf16.mxu1 %v3030_v61 }
 0x566   :  { %2470 = vmatpush1.bf16.msra.mxu0 %v3037_v2  ;;  %2502 = vmatpush1.bf16.msra.mxu1 %v3041_v5 }
 0x567   :  { %2472 = vmatprep.subr.bf16.mxu0 %v3045_v8  ;;  %2504 = vmatprep.subr.bf16.mxu1 %v3049_v11 }
 0x56a   :  { %2474 = vmatpush1.bf16.msra.mxu0 %v3056_v15  ;;  %2506 = vmatpush1.bf16.msra.mxu1 %v3060_v19 }
 0x56b   :  { %2476 = vmatprep.subr.bf16.mxu0 %v3064_v24  ;;  %2508 = vmatprep.subr.bf16.mxu1 %v3068_v28 }
 0x56e   :  { %2478 = vmatpush1.bf16.msra.mxu0 %v3075_v33  ;;  %2510 = vmatpush1.bf16.msra.mxu1 %v3079_v39 }
 0x56f   :  { %2480 = vmatprep.subr.bf16.mxu0 %v3083_v43  ;;  %2512 = vmatprep.subr.bf16.mxu1 %v3087_v46 }
 0x572   :  { %2482 = vmatpush1.bf16.msra.mxu0 %v3094_v52  ;;  %2514 = vmatpush1.bf16.msra.mxu1 %v3098_v56 }
 0x573   :  { %2484 = vmatprep.subr.bf16.mxu0 %v3102_v60  ;;  %2516 = vmatprep.subr.bf16.mxu1 %v3106_v1 }
 0x576   :  { %2486 = vmatpush1.bf16.msra.mxu0 %v3113_v4  ;;  %2518 = vmatpush1.bf16.msra.mxu1 %v3117_v6 }
 0x577   :  { %2520 = vmatprep.subr.bf16.mxu0 %v2979_v17  ;;  %2552 = vmatprep.subr.bf16.mxu1 %v2981_v21 }
 0x62c   :  { %v1395_v3 = vpop.f32.mrb[10].mxu0  ;;  %v1466_v7 = vpop.f32.mrb[10].mxu1 }
 0x62d   :  { %v2617_v9 = vadd.f32 %v1395_v3, %v3169_v14  ;;  %v1397_v10 = vpop.f32.mrb[11].mxu0  ;;  %v1468_v20 = vpop.f32.mrb[11].mxu1  ;;  %v2633_v30 = vadd.f32 %v1466_v7, %v3175_v36  ;;  %v1857_v3 = vld [vmem:[#allocation6 + $0x20] sm:$0xff]  ;;  %v1858_v7 = vld [vmem:[#allocation6 + $0x28] sm:$0xff] }
 0x62e   :  { %v2618_v23 = vadd.f32 %v1397_v10, %v3171_v16  ;;  %v2634_v31 = vadd.f32 %v1468_v20, %v3178_v44  ;;  %v1859_v10 = vld [vmem:[#allocation6 + $0x30] sm:$0xff]  ;;  %v1860_v20 = vld [vmem:[#allocation6 + $0x38] sm:$0xff] }
 0x62f   :  { %v2001_v26 = vmul.f32 -1.442695, %v2617_v9  ;;  %v2003_v32 = vmul.f32 -1.442695, %v2633_v30  ;;  %v2590_v9 = vpack.c.bf16 %v1858_v7, %v1857_v3 }
 0x630   :  { %v2002_v27 = vmul.f32 -1.442695, %v2618_v23  ;;  %v2593_v23 = vpack.c.bf16 %v1860_v20, %v1859_v10 }
 0x631   :  { %2761 = vpow2.f32 %v2001_v26  ;;  %v1861_v26 = vld [vmem:[#allocation6 + $0x40] sm:$0xff] }
 0x632   :  { %2763 = vpow2.f32 %v2002_v27  ;;  %v1862_v27 = vld [vmem:[#allocation6 + $0x48] sm:$0xff] }
 0x633   :  { %2765 = vtanh.f32 %v2634_v31  ;;  %v2596_v30 = vpack.c.bf16 %v1862_v27, %v1861_v26  ;;  %v1863_v31 = vld [vmem:[#allocation6 + $0x50] sm:$0xff] }
 0x634   :  { %2767 = vpow2.f32 %v2003_v32  ;;  %v1864_v32 = vld [vmem:[#allocation6 + $0x58] sm:$0xff] }
 0x63b   :  { %v2762_v17 = vpop.eup %2761 }
 0x63c   :  { %v1484_v37 = vadd.f32 1.0, %v2762_v17  ;;  %v2764_v21 = vpop.eup %2763  ;;  %v2599_v17 = vpack.c.bf16 %v1864_v32, %v1863_v31 }
 0x63d   :  { %v1485_v40 = vadd.f32 1.0, %v2764_v21  ;;  %v2766_v41 = vpop.eup %2765  ;;  %v1866_v21 = vld [vmem:[#allocation6 + $0x68] sm:$0xff] }
 0x63e   :  { %2769 = vrcp.f32 %v1484_v37  ;;  %v2768_v45 = vpop.eup %2767  ;;  %v1865_v37 = vld [vmem:[#allocation6 + $0x60] sm:$0xff] }
 0x63f   :  { %2771 = vrcp.f32 %v1485_v40  ;;  %v1486_v53 = vadd.f32 1.0, %v2768_v45  ;;  %v2602_v40 = vpack.c.bf16 %v1866_v21, %v1865_v37  ;;  %v1868_v45 = vld [vmem:[#allocation6 + $0x78] sm:$0xff] }
 0x641   :  { %2773 = vrcp.f32 %v1486_v53 }
 0x648   :  { %v2770_v48 = vpop.eup %2769 }
 0x649   :  { %v1495_v49 = vmul.f32 %v2770_v48, %v2766_v41  ;;  %v2772_v51 = vpop.eup %2771  ;;  %v1867_v41 = vld [vmem:[#allocation6 + $0x70] sm:$0xff] }
 0x64a   :  { %v1494_v55 = vmul.f32 %v2772_v51, %v3349_v63  ;;  %v1855_v63 = vld [vmem:[#allocation6 + $0x10] sm:$0xff]  ;;  %v2605_v48 = vpack.c.bf16 %v1868_v45, %v1867_v41 }
 0x64b   :  { %v2774_v59 = vpop.eup %2773  ;;  %v2587_v18 = vpack.c.bf16 %v1856_v13, %v1855_v63 }
 0x64c   :  { %v3391_v57 = vadd.f32 %v1495_v49, %v1494_v55 }
 0x64e   :  { %2775 = vtanh.f32 %v3391_v57 }
 0x658   :  { %v2776_v62 = vpop.eup %2775 }
 0x659   :  { %v1498_v12 = vmul.f32 %v2776_v62, %v2774_v59 }
 0x65b   :  { %1571 = vmatmul.mubr.f32.vlgmr.msra.gmra.mrb[12].mxu0 %v1498_v12  ;;  %1642 = vmatmul.mubr.f32.vlgmr.msra.gmra.mrb[12].mxu1 %v1498_v12 }
 0x65c   :  { %2522 = vmatpush1.bf16.msra.mxu0 %v2983_v22  ;;  %2554 = vmatpush1.bf16.msra.mxu1 %v2986_v25 }
 0x65d   :  { %2524 = vmatprep.subr.bf16.mxu0 %v2990_v29  ;;  %2556 = vmatprep.subr.bf16.mxu1 %v2997_v34 }
 0x65e   :  { %1747 = vmatprep.mubr.f32.mxu0 %v2887_v0  ;;  %1818 = vmatprep.mubr.f32.mxu1 %v2887_v0 }
 0x660   :  { %2526 = vmatpush1.bf16.msra.mxu0 %v2999_v35  ;;  %2558 = vmatpush1.bf16.msra.mxu1 %v3003_v38 }
 0x661   :  { %2528 = vmatprep.subr.bf16.mxu0 %v3007_v42  ;;  %2560 = vmatprep.subr.bf16.mxu1 %v3014_v47 }
 0x664   :  { %2530 = vmatpush1.bf16.msra.mxu0 %v3018_v50  ;;  %2562 = vmatpush1.bf16.msra.mxu1 %v3022_v54 }
 0x665   :  { %2532 = vmatprep.subr.bf16.mxu0 %v3026_v58  ;;  %2564 = vmatprep.subr.bf16.mxu1 %v3030_v61 }
 0x668   :  { %2534 = vmatpush1.bf16.msra.mxu0 %v3037_v2  ;;  %2566 = vmatpush1.bf16.msra.mxu1 %v3041_v5 }
 0x669   :  { %2536 = vmatprep.subr.bf16.mxu0 %v3045_v8  ;;  %2568 = vmatprep.subr.bf16.mxu1 %v3049_v11 }
 0x66c   :  { %2538 = vmatpush1.bf16.msra.mxu0 %v3056_v15  ;;  %2570 = vmatpush1.bf16.msra.mxu1 %v3060_v19 }
 0x66d   :  { %2540 = vmatprep.subr.bf16.mxu0 %v3064_v24  ;;  %2572 = vmatprep.subr.bf16.mxu1 %v3068_v28 }
 0x670   :  { %2542 = vmatpush1.bf16.msra.mxu0 %v3075_v33  ;;  %2574 = vmatpush1.bf16.msra.mxu1 %v3079_v39 }
 0x671   :  { %2544 = vmatprep.subr.bf16.mxu0 %v3083_v43  ;;  %2576 = vmatprep.subr.bf16.mxu1 %v3087_v46 }
 0x674   :  { %2546 = vmatpush1.bf16.msra.mxu0 %v3094_v52  ;;  %2578 = vmatpush1.bf16.msra.mxu1 %v3098_v56 }
 0x675   :  { %2548 = vmatprep.subr.bf16.mxu0 %v3102_v60  ;;  %2580 = vmatprep.subr.bf16.mxu1 %v3106_v1  ;;  %v1853_v60 = vld [vmem:[#allocation6] sm:$0xff]  ;;  %v1854_v1 = vld [vmem:[#allocation6 + $0x8] sm:$0xff] }
 0x678   :  { %2550 = vmatpush1.bf16.msra.mxu0 %v3113_v4  ;;  %2582 = vmatpush1.bf16.msra.mxu1 %v3117_v6  ;;  %v2584_v4 = vpack.c.bf16 %v1854_v1, %v1853_v60  ;;  %v2888_v6 = vmov 0.0|0.0  }
 0x679   :  { %2583 = vmatprep.subr.bf16.mxu0 %v2888_v6 }
 0x72e   :  { %v1572_v22 = vpop.f32.mrb[12].mxu0  ;;  %v1643_v25 = vpop.f32.mrb[12].mxu1 }
 0x72f   :  { %v2619_v29 = vadd.f32 %v1572_v22, %v3169_v14  ;;  %v1574_v34 = vpop.f32.mrb[13].mxu0  ;;  %v1645_v35 = vpop.f32.mrb[13].mxu1  ;;  %v2635_v50 = vadd.f32 %v1643_v25, %v3175_v36 }
 0x730   :  { %v2620_v38 = vadd.f32 %v1574_v34, %v3171_v16  ;;  %v2636_v54 = vadd.f32 %v1645_v35, %v3178_v44 }
 0x731   :  { %v2004_v42 = vmul.f32 -1.442695, %v2619_v29  ;;  %v2006_v58 = vmul.f32 -1.442695, %v2635_v50 }
 0x732   :  { %v2005_v47 = vmul.f32 -1.442695, %v2620_v38 }
 0x733   :  { %2777 = vpow2.f32 %v2004_v42 }
 0x734   :  { %2779 = vpow2.f32 %v2005_v47 }
 0x735   :  { %2781 = vtanh.f32 %v2636_v54 }
 0x736   :  { %2783 = vpow2.f32 %v2006_v58 }
 0x73d   :  { %v2778_v61 = vpop.eup %2777 }
 0x73e   :  { %v1661_v2 = vadd.f32 1.0, %v2778_v61  ;;  %v2780_v5 = vpop.eup %2779 }
 0x73f   :  { %v1662_v8 = vadd.f32 1.0, %v2780_v5  ;;  %v2782_v11 = vpop.eup %2781  ;;  %v2010_v5 = vld [vmem:[%s3460_s5] ss:$0 sm:$0xff] }
 0x740   :  { %2785 = vrcp.f32 %v1661_v2  ;;  %v2784_v15 = vpop.eup %2783 }
 0x741   :  { %2787 = vrcp.f32 %v1662_v8  ;;  %v1663_v33 = vadd.f32 1.0, %v2784_v15 }
 0x743   :  { %2789 = vrcp.f32 %v1663_v33 }
 0x74a   :  { %v2786_v19 = vpop.eup %2785 }
 0x74b   :  { %v1672_v24 = vmul.f32 %v2786_v19, %v2782_v11  ;;  %v2788_v28 = vpop.eup %2787 }
 0x74c   :  { %v1671_v39 = vmul.f32 %v2788_v28, %v3391_v57 }
 0x74d   :  { %v2790_v46 = vpop.eup %2789 }
 0x74e   :  { %v3431_v43 = vadd.f32 %v1672_v24, %v1671_v39 }
 0x750   :  { %2791 = vtanh.f32 %v3431_v43 }
 0x75a   :  { %v2792_v52 = vpop.eup %2791 }
 0x75b   :  { %v1675_v56 = vmul.f32 %v2792_v52, %v2790_v46 }
 0x75d   :  { %1748 = vmatmul.mubr.f32.vlgmr.msra.gmra.mrb[14].mxu0 %v1675_v56  ;;  %1819 = vmatmul.mubr.f32.vlgmr.msra.gmra.mrb[14].mxu1 %v1675_v56 }
 0x75e   :  { %2585 = vmatpush3.bf16.msra.mxu0 %v2584_v4  ;;  %2060 = vmatprep.mubr.msk.f32.mxu0 %vm2889_vm1, %v2887_v0 }
 0x75f   :  { %2586 = vmatprep.subr.bf16.mxu0 %v2888_v6 }
 0x762   :  { %2588 = vmatpush3.bf16.msra.mxu0 %v2587_v18 }
 0x763   :  { %2589 = vmatprep.subr.bf16.mxu0 %v2888_v6 }
 0x766   :  { %2591 = vmatpush3.bf16.msra.mxu0 %v2590_v9 }
 0x767   :  { %2592 = vmatprep.subr.bf16.mxu0 %v2888_v6 }
 0x76a   :  { %2594 = vmatpush3.bf16.msra.mxu0 %v2593_v23 }
 0x76b   :  { %2595 = vmatprep.subr.bf16.mxu0 %v2888_v6 }
 0x76e   :  { %2597 = vmatpush3.bf16.msra.mxu0 %v2596_v30 }
 0x76f   :  { %2598 = vmatprep.subr.bf16.mxu0 %v2888_v6 }
 0x772   :  { %2600 = vmatpush3.bf16.msra.mxu0 %v2599_v17 }
 0x773   :  { %2601 = vmatprep.subr.bf16.mxu0 %v2888_v6 }
 0x776   :  { %2603 = vmatpush3.bf16.msra.mxu0 %v2602_v40 }
 0x777   :  { %2604 = vmatprep.subr.bf16.mxu0 %v2888_v6 }
 0x77a   :  { %2606 = vmatpush3.bf16.msra.mxu0 %v2605_v48 }
 0x830   :  { %v1749_v49 = vpop.f32.mrb[14].mxu0  ;;  %v1820_v51 = vpop.f32.mrb[14].mxu1 }
 0x831   :  { %v2621_v53 = vadd.f32 %v1749_v49, %v3169_v14  ;;  %v1751_v55 = vpop.f32.mrb[15].mxu0  ;;  %v1822_v57 = vpop.f32.mrb[15].mxu1  ;;  %v2637_v0 = vadd.f32 %v1820_v51, %v3175_v36 }
 0x832   :  { %v2622_v59 = vadd.f32 %v1751_v55, %v3171_v16  ;;  %v2638_v22 = vadd.f32 %v1822_v57, %v3178_v44 }
 0x833   :  { %v2007_v62 = vmul.f32 -1.442695, %v2621_v53  ;;  %v2009_v25 = vmul.f32 -1.442695, %v2637_v0 }
 0x834   :  { %v2008_v12 = vmul.f32 -1.442695, %v2622_v59 }
 0x835   :  { %2793 = vpow2.f32 %v2007_v62 }
 0x836   :  { %2795 = vpow2.f32 %v2008_v12 }
 0x837   :  { %2797 = vtanh.f32 %v2638_v22 }
 0x838   :  { %2799 = vpow2.f32 %v2009_v25 }
 0x83f   :  { %v2794_v29 = vpop.eup %2793 }
 0x840   :  { %v1838_v34 = vadd.f32 1.0, %v2794_v29  ;;  %v2796_v35 = vpop.eup %2795 }
 0x841   :  { %v1839_v14 = vadd.f32 1.0, %v2796_v35  ;;  %v2798_v38 = vpop.eup %2797 }
 0x842   :  { %2801 = vrcp.f32 %v1838_v34  ;;  %v2800_v42 = vpop.eup %2799 }
 0x843   :  { %2803 = vrcp.f32 %v1839_v14  ;;  %v1840_v54 = vadd.f32 1.0, %v2800_v42 }
 0x845   :  { %2805 = vrcp.f32 %v1840_v54 }
 0x84c   :  { %v2802_v16 = vpop.eup %2801 }
 0x84d   :  { %v1849_v47 = vmul.f32 %v2802_v16, %v2798_v38  ;;  %v2804_v50 = vpop.eup %2803 }
 0x84e   :  { %v1848_v58 = vmul.f32 %v2804_v50, %v3431_v43 }
 0x84f   :  { %v2806_v44 = vpop.eup %2805 }
 0x850   :  { %v1850_v36 = vadd.f32 %v1849_v47, %v1848_v58 }
 0x852   :  { %2807 = vtanh.f32 %v1850_v36 }
 0x85c   :  { %v2808_v61 = vpop.eup %2807 }
 0x85d   :  { %v1852_v2 = vmul.f32 %v2808_v61, %v2806_v44 }
 0x85f   :  { %2061 = vmatmul.mubr.f32.vlgmr.msra.gmra.mrb[16].mxu0 %v1852_v2 }
 0x932   :  { %v1942_v8 = vpop.f32.mrb[16].mxu0 }
 0x933   :  { %v1943_v11 = vadd.f32 %v2010_v5, %v1942_v8  ;;  %v2062_v15 = vpop.f32.mrb[17].mxu0 }
 0x935   :  { %1946 = vst [vmem:[#allocation8] sm:$0xff] %v1943_v11 }
 0x936   :  { %2864 = shalt.err (!%p2861_p6)
}
 0x937   :  { %s2865_s11 = scalar_lea.hbm %s3461_s6, 128 }
 0x938   :  { %p2866_p7 = scmp.ne.s32.totalorder %s3461_s6, %s2865_s11  ;;  %p2869_p8 = scmp.lt.u32.totalorder %s2865_s11, %s3461_s6 }
 0x93a   :  { %p2871_p9 = pnand %p2869_p8, %p2866_p7 }
 0x93c   :  { %2874 = shalt.err (!%p2871_p9)
}
 0x93d   :  { %1956 = dma.vmem_to_hbm [thread:$0]  %s1954_s7, 128, %s3461_s6, [#allocation5]  }
 0x93e   :  { %2879 = dma.done.wait [#allocation5], 128  }
 0x93f   :  { %2880 = vsyncadd [#allocation5], 4294967168 }
 0x940   :  { %1960 = vsyncpa [#allocation4], 1 }
 0x941   :  { %1961 = vsyncpa [#allocation7], 1 }
 0x942   :  { %1962 = vsyncpa [#allocation5], 1 }

</bundles_post_ra>
